<compile_context>
chip_gen: v6e
topology: v6e:2x2x1
jax: 0.10.0
libtpu: 0.0.40
codegen_flags: <defaults>
</compile_context>

<pallas_src>
import functools

import jax
import jax.numpy as jnp
from jax.experimental import pallas as pl
from jax.experimental.pallas import tpu as pltpu

# bf16 operands on the MXU (f32 accumulation via preferred_element_type).
MXU_DTYPE = jnp.bfloat16
LN_EPS = 1e-5


def _pick_row_tile(T):
    for t in (512, 256, 128, 64, 32, 16, 8):
        if T % t == 0:
            return t
    return T  # fall back to a single full-extent block


# ---------------------------------------------------------------------------
# Fused attention block: QKV proj -> per-head attention -> out proj -> add+LN1
# One grid step == one batch element (rows [n*S, (n+1)*S) of the token slab).
# ---------------------------------------------------------------------------
def _attn_block_kernel(x_ref, wq_ref, wk_ref, wv_ref, bq_ref, bk_ref, bv_ref,
                       wo_ref, bo_ref, g_ref, b_ref, o_ref, *, H, scale, eps):
    x = x_ref[...]                               # (S, E) f32
    xc = x.astype(MXU_DTYPE)

    proj = jnp.zeros(x.shape, jnp.float32)       # accumulated out-projection
    for h in range(H):                           # static loop, head on leading dim
        q = jnp.dot(xc, wq_ref[h], preferred_element_type=jnp.float32) + bq_ref[h]
        k = jnp.dot(xc, wk_ref[h], preferred_element_type=jnp.float32) + bk_ref[h]
        v = jnp.dot(xc, wv_ref[h], preferred_element_type=jnp.float32) + bv_ref[h]

        # scores = q @ k^T without an XLU transpose: contract last dims of both.
        s = jax.lax.dot_general(
            q.astype(MXU_DTYPE), k.astype(MXU_DTYPE),
            dimension_numbers=(((1,), (1,)), ((), ())),
            preferred_element_type=jnp.float32) * scale          # (S, S)

        s = s - jnp.max(s, axis=-1, keepdims=True)               # f32 softmax
        p = jnp.exp(s)
        denom = jnp.sum(p, axis=-1, keepdims=True)
        p = p * pl.reciprocal(denom, approx=True)

        o_h = jnp.dot(p.astype(MXU_DTYPE), v.astype(MXU_DTYPE),
                      preferred_element_type=jnp.float32)        # (S, Dh)
        # out-proj contribution of head h: o_h @ W_o[h*Dh:(h+1)*Dh, :]
        proj = proj + jnp.dot(o_h.astype(MXU_DTYPE), wo_ref[h],
                              preferred_element_type=jnp.float32)

    y = x + proj + bo_ref[...]                   # residual + out-proj bias
    mu = jnp.mean(y, axis=-1, keepdims=True)
    var = jnp.mean((y - mu) ** 2, axis=-1, keepdims=True)
    yhat = (y - mu) * jax.lax.rsqrt(var + eps)
    o_ref[...] = (yhat * g_ref[...] + b_ref[...]).astype(o_ref.dtype)


def attn_block(x, p, S, H, eps=LN_EPS):
    T, E = x.shape
    N = T // S
    Dh = E // H
    assert S % 8 == 0 or N == 1, "per-batch block needs S % 8 == 0"
    scale = 1.0 / float(Dh) ** 0.5

    row_spec = pl.BlockSpec((S, E), lambda n: (n, 0))

    def const_spec(shape):
        return pl.BlockSpec(shape, lambda n, _l=len(shape): (0,) * _l)

    return pl.pallas_call(
        functools.partial(_attn_block_kernel, H=H, scale=scale, eps=eps),
        out_shape=jax.ShapeDtypeStruct((T, E), x.dtype),
        grid=(N,),
        in_specs=[
            row_spec,
            const_spec((H, E, Dh)), const_spec((H, E, Dh)), const_spec((H, E, Dh)),
            const_spec((H, 1, Dh)), const_spec((H, 1, Dh)), const_spec((H, 1, Dh)),
            const_spec((H, Dh, E)), const_spec((1, E)),
            const_spec((1, E)), const_spec((1, E)),
        ],
        out_specs=row_spec,
        compiler_params=pltpu.CompilerParams(dimension_semantics=("parallel",)),
    )(x, p["w_q"], p["w_k"], p["w_v"], p["b_q"], p["b_k"], p["b_v"],
      p["w_o"], p["b_o"], p["ln1_g"], p["ln1_b"])


# ---------------------------------------------------------------------------
# Fused FFN block: Linear1 + ReLU -> Linear2 -> residual add + LayerNorm2.
# Grid over row tiles; weights use constant block indices (VMEM-resident).
# ---------------------------------------------------------------------------
def _ffn_block_kernel(x_ref, w1_ref, b1_ref, w2_ref, b2_ref, g_ref, b_ref,
                      o_ref, *, eps):
    x = x_ref[...]                                                 # (tm, E) f32
    h = jnp.dot(x.astype(MXU_DTYPE), w1_ref[...],
                preferred_element_type=jnp.float32) + b1_ref[...]
    h = jnp.maximum(h, 0.0)                                        # ReLU
    f = jnp.dot(h.astype(MXU_DTYPE), w2_ref[...],
                preferred_element_type=jnp.float32) + b2_ref[...]
    y = x + f
    mu = jnp.mean(y, axis=-1, keepdims=True)
    var = jnp.mean((y - mu) ** 2, axis=-1, keepdims=True)
    yhat = (y - mu) * jax.lax.rsqrt(var + eps)
    o_ref[...] = (yhat * g_ref[...] + b_ref[...]).astype(o_ref.dtype)


def ffn_block(x, p, eps=LN_EPS):
    T, E = x.shape
    Dff = p["w_ff1"].shape[1]
    tm = _pick_row_tile(T)

    row_spec = pl.BlockSpec((tm, E), lambda i: (i, 0))

    def const_spec(shape):
        return pl.BlockSpec(shape, lambda i, _l=len(shape): (0,) * _l)

    return pl.pallas_call(
        functools.partial(_ffn_block_kernel, eps=eps),
        out_shape=jax.ShapeDtypeStruct((T, E), x.dtype),
        grid=(T // tm,),
        in_specs=[
            row_spec,
            const_spec((E, Dff)), const_spec((1, Dff)),
            const_spec((Dff, E)), const_spec((1, E)),
            const_spec((1, E)), const_spec((1, E)),
        ],
        out_specs=row_spec,
        compiler_params=pltpu.CompilerParams(dimension_semantics=("parallel",)),
    )(x, p["w_ff1"], p["b_ff1"], p["w_ff2"], p["b_ff2"], p["ln2_g"], p["ln2_b"])


# ---------------------------------------------------------------------------
# Final (optional) LayerNorm — no zeros residual is materialized.
# ---------------------------------------------------------------------------
def _ln_kernel(x_ref, g_ref, b_ref, o_ref, *, eps):
    x = x_ref[...]
    mu = jnp.mean(x, axis=-1, keepdims=True)
    var = jnp.mean((x - mu) ** 2, axis=-1, keepdims=True)
    yhat = (x - mu) * jax.lax.rsqrt(var + eps)
    o_ref[...] = (yhat * g_ref[...] + b_ref[...]).astype(o_ref.dtype)


def layernorm(x, g, b, eps=LN_EPS):
    T, E = x.shape
    tm = _pick_row_tile(T)
    row_spec = pl.BlockSpec((tm, E), lambda i: (i, 0))
    vec_spec = pl.BlockSpec((1, E), lambda i: (0, 0))
    return pl.pallas_call(
        functools.partial(_ln_kernel, eps=eps),
        out_shape=jax.ShapeDtypeStruct((T, E), x.dtype),
        grid=(T // tm,),
        in_specs=[row_spec, vec_spec, vec_spec],
        out_specs=row_spec,
        compiler_params=pltpu.CompilerParams(dimension_semantics=("parallel",)),
    )(x, g, b)


# ---------------------------------------------------------------------------
# Encoder stack
# ---------------------------------------------------------------------------
def transformer_encoder(src, layer_params, final_norm, H):
    S, N, E = src.shape
    # one-time layout change to batch-major tokens (S,N,E) -> (N*S, E)
    x = jnp.transpose(src, (1, 0, 2)).reshape(N * S, E)
    for p in layer_params:
        x = attn_block(x, p, S, H)      # MHA + residual + LayerNorm1
        x = ffn_block(x, p)             # FFN + residual + LayerNorm2
    if final_norm is not None:          # optional `norm` of TransformerEncoder
        x = layernorm(x, final_norm["g"], final_norm["b"])
    return jnp.transpose(x.reshape(N, S, E), (1, 0, 2))


# ---------------------------------------------------------------------------
# Parameters: init in PyTorch-like fused layout, then reshape for the kernels
# (per-head leading dims, bf16 matmul weights, f32 biases / LN params).
# ---------------------------------------------------------------------------
def init_params(key, num_layers, E, Dff):
    layer_params = []
    for i in range(num_layers):
        k = jax.random.fold_in(key, i)
        ks = jax.random.split(k, 4)
        layer_params.append({
            "w_qkv": 0.05 * jax.random.normal(ks[0], (E, 3 * E), jnp.float32),
            "b_qkv": jnp.zeros((3 * E,), jnp.float32),
            "w_o": 0.05 * jax.random.normal(ks[1], (E, E), jnp.float32),
            "b_o": jnp.zeros((E,), jnp.float32),
            "ln1_g": jnp.ones((E,), jnp.float32),
            "ln1_b": jnp.zeros((E,), jnp.float32),
            "w_ff1": 0.05 * jax.random.normal(ks[2], (E, Dff), jnp.float32),
            "b_ff1": jnp.zeros((Dff,), jnp.float32),
            "w_ff2": 0.05 * jax.random.normal(ks[3], (Dff, E), jnp.float32),
            "b_ff2": jnp.zeros((E,), jnp.float32),
            "ln2_g": jnp.ones((E,), jnp.float32),
            "ln2_b": jnp.zeros((E,), jnp.float32),
        })
    final_norm = {"g": jnp.ones((E,), jnp.float32), "b": jnp.zeros((E,), jnp.float32)}
    return layer_params, final_norm


def prepare_layer_params(p, E, H):
    Dh = E // H
    Dff = p["w_ff1"].shape[1]

    def split_heads_w(w):   # (E, E) -> (H, E, Dh): head h = columns [h*Dh,(h+1)*Dh)
        return jnp.transpose(w.reshape(E, H, Dh), (1, 0, 2))

    wq, wk, wv = jnp.split(p["w_qkv"], 3, axis=1)
    bq, bk, bv = jnp.split(p["b_qkv"], 3)
    return {
        "w_q": split_heads_w(wq).astype(MXU_DTYPE),
        "w_k": split_heads_w(wk).astype(MXU_DTYPE),
        "w_v": split_heads_w(wv).astype(MXU_DTYPE),
        "b_q": bq.reshape(H, 1, Dh),
        "b_k": bk.reshape(H, 1, Dh),
        "b_v": bv.reshape(H, 1, Dh),
        # (E,E) -> (H, Dh, E): head h = rows [h*Dh,(h+1)*Dh) of W_o
        "w_o": p["w_o"].reshape(H, Dh, E).astype(MXU_DTYPE),
        "b_o": p["b_o"].reshape(1, E),
        "ln1_g": p["ln1_g"].reshape(1, E),
        "ln1_b": p["ln1_b"].reshape(1, E),
        "w_ff1": p["w_ff1"].astype(MXU_DTYPE),
        "b_ff1": p["b_ff1"].reshape(1, Dff),
        "w_ff2": p["w_ff2"].astype(MXU_DTYPE),
        "b_ff2": p["b_ff2"].reshape(1, E),
        "ln2_g": p["ln2_g"].reshape(1, E),
        "ln2_b": p["ln2_b"].reshape(1, E),
    }


if __name__ == "__main__":
    S, N, E, H, Dff, num_layers = 8, 2, 32, 4, 64, 2

    key = jax.random.PRNGKey(0)
    k_src, k_par = jax.random.split(key)
    src = jax.random.normal(k_src, (S, N, E), jnp.float32)   # (seq, batch, d_model)

    raw_layers, raw_final = init_params(k_par, num_layers, E, Dff)
    layers = [prepare_layer_params(p, E, H) for p in raw_layers]
    final_norm = {"g": raw_final["g"].reshape(1, E), "b": raw_final["b"].reshape(1, E)}

    fwd = jax.jit(functools.partial(transformer_encoder, H=H))
    out = fwd(src, layers, final_norm)
    out = jax.block_until_ready(out)
    assert out.shape == (S, N, E) and out.dtype == jnp.float32
    print("KERNEL_OK")
</pallas_src>

<mosaic_0001>
module attributes {stable_mosaic.version = 11 : i64} {
  func.func @_attn_block_kernel(%arg0: i32, %arg1: memref<8x32xf32, #tpu.memory_space<vmem>>, %arg2: memref<4x32x8xbf16, #tpu.memory_space<vmem>>, %arg3: memref<4x32x8xbf16, #tpu.memory_space<vmem>>, %arg4: memref<4x32x8xbf16, #tpu.memory_space<vmem>>, %arg5: memref<4x1x8xf32, #tpu.memory_space<vmem>>, %arg6: memref<4x1x8xf32, #tpu.memory_space<vmem>>, %arg7: memref<4x1x8xf32, #tpu.memory_space<vmem>>, %arg8: memref<4x8x32xbf16, #tpu.memory_space<vmem>>, %arg9: memref<1x32xf32, #tpu.memory_space<vmem>>, %arg10: memref<1x32xf32, #tpu.memory_space<vmem>>, %arg11: memref<1x32xf32, #tpu.memory_space<vmem>>, %arg12: memref<8x32xf32, #tpu.memory_space<vmem>>) attributes {dimension_semantics = [#tpu.dimension_semantics<parallel>], iteration_bounds = array<i64: 2>, scalar_prefetch = 0 : i64, scratch_operands = 0 : i64, tpu.core_type = #tpu.core_type<tc>, window_params = [{transform_indices = @transform_0, window_bounds = array<i64: 8, 32>}, {pipeline_mode = #tpu.pipeline_mode<synchronous>, transform_indices = @transform_1, window_bounds = array<i64: 4, 32, 8>}, {pipeline_mode = #tpu.pipeline_mode<synchronous>, transform_indices = @transform_2, window_bounds = array<i64: 4, 32, 8>}, {pipeline_mode = #tpu.pipeline_mode<synchronous>, transform_indices = @transform_3, window_bounds = array<i64: 4, 32, 8>}, {pipeline_mode = #tpu.pipeline_mode<synchronous>, transform_indices = @transform_4, window_bounds = array<i64: 4, 1, 8>}, {pipeline_mode = #tpu.pipeline_mode<synchronous>, transform_indices = @transform_5, window_bounds = array<i64: 4, 1, 8>}, {pipeline_mode = #tpu.pipeline_mode<synchronous>, transform_indices = @transform_6, window_bounds = array<i64: 4, 1, 8>}, {pipeline_mode = #tpu.pipeline_mode<synchronous>, transform_indices = @transform_7, window_bounds = array<i64: 4, 8, 32>}, {pipeline_mode = #tpu.pipeline_mode<synchronous>, transform_indices = @transform_8, window_bounds = array<i64: 1, 32>}, {pipeline_mode = #tpu.pipeline_mode<synchronous>, transform_indices = @transform_9, window_bounds = array<i64: 1, 32>}, {pipeline_mode = #tpu.pipeline_mode<synchronous>, transform_indices = @transform_10, window_bounds = array<i64: 1, 32>}, {transform_indices = @transform_11, window_bounds = array<i64: 8, 32>}]} {
    %c0 = arith.constant 0 : index
    %c0_0 = arith.constant 0 : index
    %0 = vector.load %arg1[%c0, %c0_0] : memref<8x32xf32, #tpu.memory_space<vmem>>, vector<8x32xf32>
    %1 = arith.truncf %0 : vector<8x32xf32> to vector<8x32xbf16>
    %cst = arith.constant 0.000000e+00 : f32
    %2 = vector.broadcast %cst : f32 to vector<8x32xf32>
    %c0_1 = arith.constant 0 : index
    %c0_2 = arith.constant 0 : index
    %c0_3 = arith.constant 0 : index
    %3 = vector.load %arg2[%c0_1, %c0_2, %c0_3] : memref<4x32x8xbf16, #tpu.memory_space<vmem>>, vector<1x32x8xbf16>
    %4 = vector.shape_cast %3 : vector<1x32x8xbf16> to vector<32x8xbf16>
    %cst_4 = arith.constant dense<0.000000e+00> : vector<8x8xf32>
    %5 = tpu.matmul %1, %4, %cst_4 {dimension_numbers = #tpu.dot_dimension_numbers<[1], [0], [0], [1], [0, 0, 1, 1], [], []>} : vector<8x32xbf16>, vector<32x8xbf16>, vector<8x8xf32> -> vector<8x8xf32>
    %c0_5 = arith.constant 0 : index
    %c0_6 = arith.constant 0 : index
    %c0_7 = arith.constant 0 : index
    %6 = vector.load %arg5[%c0_5, %c0_6, %c0_7] : memref<4x1x8xf32, #tpu.memory_space<vmem>>, vector<1x1x8xf32>
    %7 = vector.shape_cast %6 : vector<1x1x8xf32> to vector<1x8xf32>
    %8 = vector.broadcast %7 : vector<1x8xf32> to vector<8x8xf32>
    %9 = arith.addf %5, %8 : vector<8x8xf32>
    %c0_8 = arith.constant 0 : index
    %c0_9 = arith.constant 0 : index
    %c0_10 = arith.constant 0 : index
    %10 = vector.load %arg3[%c0_8, %c0_9, %c0_10] : memref<4x32x8xbf16, #tpu.memory_space<vmem>>, vector<1x32x8xbf16>
    %11 = vector.shape_cast %10 : vector<1x32x8xbf16> to vector<32x8xbf16>
    %cst_11 = arith.constant dense<0.000000e+00> : vector<8x8xf32>
    %12 = tpu.matmul %1, %11, %cst_11 {dimension_numbers = #tpu.dot_dimension_numbers<[1], [0], [0], [1], [0, 0, 1, 1], [], []>} : vector<8x32xbf16>, vector<32x8xbf16>, vector<8x8xf32> -> vector<8x8xf32>
    %c0_12 = arith.constant 0 : index
    %c0_13 = arith.constant 0 : index
    %c0_14 = arith.constant 0 : index
    %13 = vector.load %arg6[%c0_12, %c0_13, %c0_14] : memref<4x1x8xf32, #tpu.memory_space<vmem>>, vector<1x1x8xf32>
    %14 = vector.shape_cast %13 : vector<1x1x8xf32> to vector<1x8xf32>
    %15 = vector.broadcast %14 : vector<1x8xf32> to vector<8x8xf32>
    %16 = arith.addf %12, %15 : vector<8x8xf32>
    %c0_15 = arith.constant 0 : index
    %c0_16 = arith.constant 0 : index
    %c0_17 = arith.constant 0 : index
    %17 = vector.load %arg4[%c0_15, %c0_16, %c0_17] : memref<4x32x8xbf16, #tpu.memory_space<vmem>>, vector<1x32x8xbf16>
    %18 = vector.shape_cast %17 : vector<1x32x8xbf16> to vector<32x8xbf16>
    %cst_18 = arith.constant dense<0.000000e+00> : vector<8x8xf32>
    %19 = tpu.matmul %1, %18, %cst_18 {dimension_numbers = #tpu.dot_dimension_numbers<[1], [0], [0], [1], [0, 0, 1, 1], [], []>} : vector<8x32xbf16>, vector<32x8xbf16>, vector<8x8xf32> -> vector<8x8xf32>
    %c0_19 = arith.constant 0 : index
    %c0_20 = arith.constant 0 : index
    %c0_21 = arith.constant 0 : index
    %20 = vector.load %arg7[%c0_19, %c0_20, %c0_21] : memref<4x1x8xf32, #tpu.memory_space<vmem>>, vector<1x1x8xf32>
    %21 = vector.shape_cast %20 : vector<1x1x8xf32> to vector<1x8xf32>
    %22 = vector.broadcast %21 : vector<1x8xf32> to vector<8x8xf32>
    %23 = arith.addf %19, %22 : vector<8x8xf32>
    %24 = arith.truncf %9 : vector<8x8xf32> to vector<8x8xbf16>
    %25 = arith.truncf %16 : vector<8x8xf32> to vector<8x8xbf16>
    %cst_22 = arith.constant dense<0.000000e+00> : vector<8x8xf32>
    %26 = tpu.matmul %24, %25, %cst_22 {dimension_numbers = #tpu.dot_dimension_numbers<[1], [1], [0], [0], [0, 0, 1, 0], [], []>} : vector<8x8xbf16>, vector<8x8xbf16>, vector<8x8xf32> -> vector<8x8xf32>
    %cst_23 = arith.constant 0.353553385 : f32
    %27 = vector.broadcast %cst_23 : f32 to vector<8x8xf32>
    %28 = arith.mulf %26, %27 : vector<8x8xf32>
    %cst_24 = arith.constant dense<0xFF800000> : vector<8xf32>
    %29 = vector.multi_reduction <maximumf>, %28, %cst_24 [1] : vector<8x8xf32> to vector<8xf32>
    %30 = vector.shape_cast %29 : vector<8xf32> to vector<8x1xf32>
    %31 = vector.broadcast %30 : vector<8x1xf32> to vector<8x8xf32>
    %32 = arith.subf %28, %31 : vector<8x8xf32>
    %33 = math.exp %32 : vector<8x8xf32>
    %cst_25 = arith.constant dense<0.000000e+00> : vector<8xf32>
    %34 = vector.multi_reduction <add>, %33, %cst_25 [1] : vector<8x8xf32> to vector<8xf32>
    %35 = vector.shape_cast %34 : vector<8xf32> to vector<8x1xf32>
    %36 = tpu.reciprocal %35 {approx = true} : vector<8x1xf32> -> vector<8x1xf32>
    %37 = vector.broadcast %36 : vector<8x1xf32> to vector<8x8xf32>
    %38 = arith.mulf %33, %37 : vector<8x8xf32>
    %39 = arith.truncf %38 : vector<8x8xf32> to vector<8x8xbf16>
    %40 = arith.truncf %23 : vector<8x8xf32> to vector<8x8xbf16>
    %cst_26 = arith.constant dense<0.000000e+00> : vector<8x8xf32>
    %41 = tpu.matmul %39, %40, %cst_26 {dimension_numbers = #tpu.dot_dimension_numbers<[1], [0], [0], [1], [0, 0, 1, 1], [], []>} : vector<8x8xbf16>, vector<8x8xbf16>, vector<8x8xf32> -> vector<8x8xf32>
    %42 = arith.truncf %41 : vector<8x8xf32> to vector<8x8xbf16>
    %c0_27 = arith.constant 0 : index
    %c0_28 = arith.constant 0 : index
    %c0_29 = arith.constant 0 : index
    %43 = vector.load %arg8[%c0_27, %c0_28, %c0_29] : memref<4x8x32xbf16, #tpu.memory_space<vmem>>, vector<1x8x32xbf16>
    %44 = vector.shape_cast %43 : vector<1x8x32xbf16> to vector<8x32xbf16>
    %cst_30 = arith.constant dense<0.000000e+00> : vector<8x32xf32>
    %45 = tpu.matmul %42, %44, %cst_30 {dimension_numbers = #tpu.dot_dimension_numbers<[1], [0], [0], [1], [0, 0, 1, 1], [], []>} : vector<8x8xbf16>, vector<8x32xbf16>, vector<8x32xf32> -> vector<8x32xf32>
    %46 = arith.addf %2, %45 : vector<8x32xf32>
    %c1 = arith.constant 1 : index
    %c0_31 = arith.constant 0 : index
    %c0_32 = arith.constant 0 : index
    %47 = vector.load %arg2[%c1, %c0_31, %c0_32] : memref<4x32x8xbf16, #tpu.memory_space<vmem>>, vector<1x32x8xbf16>
    %48 = vector.shape_cast %47 : vector<1x32x8xbf16> to vector<32x8xbf16>
    %cst_33 = arith.constant dense<0.000000e+00> : vector<8x8xf32>
    %49 = tpu.matmul %1, %48, %cst_33 {dimension_numbers = #tpu.dot_dimension_numbers<[1], [0], [0], [1], [0, 0, 1, 1], [], []>} : vector<8x32xbf16>, vector<32x8xbf16>, vector<8x8xf32> -> vector<8x8xf32>
    %c1_34 = arith.constant 1 : index
    %c0_35 = arith.constant 0 : index
    %c0_36 = arith.constant 0 : index
    %50 = vector.load %arg5[%c1_34, %c0_35, %c0_36] : memref<4x1x8xf32, #tpu.memory_space<vmem>>, vector<1x1x8xf32>
    %51 = vector.shape_cast %50 : vector<1x1x8xf32> to vector<1x8xf32>
    %52 = vector.broadcast %51 : vector<1x8xf32> to vector<8x8xf32>
    %53 = arith.addf %49, %52 : vector<8x8xf32>
    %c1_37 = arith.constant 1 : index
    %c0_38 = arith.constant 0 : index
    %c0_39 = arith.constant 0 : index
    %54 = vector.load %arg3[%c1_37, %c0_38, %c0_39] : memref<4x32x8xbf16, #tpu.memory_space<vmem>>, vector<1x32x8xbf16>
    %55 = vector.shape_cast %54 : vector<1x32x8xbf16> to vector<32x8xbf16>
    %cst_40 = arith.constant dense<0.000000e+00> : vector<8x8xf32>
    %56 = tpu.matmul %1, %55, %cst_40 {dimension_numbers = #tpu.dot_dimension_numbers<[1], [0], [0], [1], [0, 0, 1, 1], [], []>} : vector<8x32xbf16>, vector<32x8xbf16>, vector<8x8xf32> -> vector<8x8xf32>
    %c1_41 = arith.constant 1 : index
    %c0_42 = arith.constant 0 : index
    %c0_43 = arith.constant 0 : index
    %57 = vector.load %arg6[%c1_41, %c0_42, %c0_43] : memref<4x1x8xf32, #tpu.memory_space<vmem>>, vector<1x1x8xf32>
    %58 = vector.shape_cast %57 : vector<1x1x8xf32> to vector<1x8xf32>
    %59 = vector.broadcast %58 : vector<1x8xf32> to vector<8x8xf32>
    %60 = arith.addf %56, %59 : vector<8x8xf32>
    %c1_44 = arith.constant 1 : index
    %c0_45 = arith.constant 0 : index
    %c0_46 = arith.constant 0 : index
    %61 = vector.load %arg4[%c1_44, %c0_45, %c0_46] : memref<4x32x8xbf16, #tpu.memory_space<vmem>>, vector<1x32x8xbf16>
    %62 = vector.shape_cast %61 : vector<1x32x8xbf16> to vector<32x8xbf16>
    %cst_47 = arith.constant dense<0.000000e+00> : vector<8x8xf32>
    %63 = tpu.matmul %1, %62, %cst_47 {dimension_numbers = #tpu.dot_dimension_numbers<[1], [0], [0], [1], [0, 0, 1, 1], [], []>} : vector<8x32xbf16>, vector<32x8xbf16>, vector<8x8xf32> -> vector<8x8xf32>
    %c1_48 = arith.constant 1 : index
    %c0_49 = arith.constant 0 : index
    %c0_50 = arith.constant 0 : index
    %64 = vector.load %arg7[%c1_48, %c0_49, %c0_50] : memref<4x1x8xf32, #tpu.memory_space<vmem>>, vector<1x1x8xf32>
    %65 = vector.shape_cast %64 : vector<1x1x8xf32> to vector<1x8xf32>
    %66 = vector.broadcast %65 : vector<1x8xf32> to vector<8x8xf32>
    %67 = arith.addf %63, %66 : vector<8x8xf32>
    %68 = arith.truncf %53 : vector<8x8xf32> to vector<8x8xbf16>
    %69 = arith.truncf %60 : vector<8x8xf32> to vector<8x8xbf16>
    %cst_51 = arith.constant dense<0.000000e+00> : vector<8x8xf32>
    %70 = tpu.matmul %68, %69, %cst_51 {dimension_numbers = #tpu.dot_dimension_numbers<[1], [1], [0], [0], [0, 0, 1, 0], [], []>} : vector<8x8xbf16>, vector<8x8xbf16>, vector<8x8xf32> -> vector<8x8xf32>
    %cst_52 = arith.constant 0.353553385 : f32
    %71 = vector.broadcast %cst_52 : f32 to vector<8x8xf32>
    %72 = arith.mulf %70, %71 : vector<8x8xf32>
    %cst_53 = arith.constant dense<0xFF800000> : vector<8xf32>
    %73 = vector.multi_reduction <maximumf>, %72, %cst_53 [1] : vector<8x8xf32> to vector<8xf32>
    %74 = vector.shape_cast %73 : vector<8xf32> to vector<8x1xf32>
    %75 = vector.broadcast %74 : vector<8x1xf32> to vector<8x8xf32>
    %76 = arith.subf %72, %75 : vector<8x8xf32>
    %77 = math.exp %76 : vector<8x8xf32>
    %cst_54 = arith.constant dense<0.000000e+00> : vector<8xf32>
    %78 = vector.multi_reduction <add>, %77, %cst_54 [1] : vector<8x8xf32> to vector<8xf32>
    %79 = vector.shape_cast %78 : vector<8xf32> to vector<8x1xf32>
    %80 = tpu.reciprocal %79 {approx = true} : vector<8x1xf32> -> vector<8x1xf32>
    %81 = vector.broadcast %80 : vector<8x1xf32> to vector<8x8xf32>
    %82 = arith.mulf %77, %81 : vector<8x8xf32>
    %83 = arith.truncf %82 : vector<8x8xf32> to vector<8x8xbf16>
    %84 = arith.truncf %67 : vector<8x8xf32> to vector<8x8xbf16>
    %cst_55 = arith.constant dense<0.000000e+00> : vector<8x8xf32>
    %85 = tpu.matmul %83, %84, %cst_55 {dimension_numbers = #tpu.dot_dimension_numbers<[1], [0], [0], [1], [0, 0, 1, 1], [], []>} : vector<8x8xbf16>, vector<8x8xbf16>, vector<8x8xf32> -> vector<8x8xf32>
    %86 = arith.truncf %85 : vector<8x8xf32> to vector<8x8xbf16>
    %c1_56 = arith.constant 1 : index
    %c0_57 = arith.constant 0 : index
    %c0_58 = arith.constant 0 : index
    %87 = vector.load %arg8[%c1_56, %c0_57, %c0_58] : memref<4x8x32xbf16, #tpu.memory_space<vmem>>, vector<1x8x32xbf16>
    %88 = vector.shape_cast %87 : vector<1x8x32xbf16> to vector<8x32xbf16>
    %cst_59 = arith.constant dense<0.000000e+00> : vector<8x32xf32>
    %89 = tpu.matmul %86, %88, %cst_59 {dimension_numbers = #tpu.dot_dimension_numbers<[1], [0], [0], [1], [0, 0, 1, 1], [], []>} : vector<8x8xbf16>, vector<8x32xbf16>, vector<8x32xf32> -> vector<8x32xf32>
    %90 = arith.addf %46, %89 : vector<8x32xf32>
    %c2 = arith.constant 2 : index
    %c0_60 = arith.constant 0 : index
    %c0_61 = arith.constant 0 : index
    %91 = vector.load %arg2[%c2, %c0_60, %c0_61] : memref<4x32x8xbf16, #tpu.memory_space<vmem>>, vector<1x32x8xbf16>
    %92 = vector.shape_cast %91 : vector<1x32x8xbf16> to vector<32x8xbf16>
    %cst_62 = arith.constant dense<0.000000e+00> : vector<8x8xf32>
    %93 = tpu.matmul %1, %92, %cst_62 {dimension_numbers = #tpu.dot_dimension_numbers<[1], [0], [0], [1], [0, 0, 1, 1], [], []>} : vector<8x32xbf16>, vector<32x8xbf16>, vector<8x8xf32> -> vector<8x8xf32>
    %c2_63 = arith.constant 2 : index
    %c0_64 = arith.constant 0 : index
    %c0_65 = arith.constant 0 : index
    %94 = vector.load %arg5[%c2_63, %c0_64, %c0_65] : memref<4x1x8xf32, #tpu.memory_space<vmem>>, vector<1x1x8xf32>
    %95 = vector.shape_cast %94 : vector<1x1x8xf32> to vector<1x8xf32>
    %96 = vector.broadcast %95 : vector<1x8xf32> to vector<8x8xf32>
    %97 = arith.addf %93, %96 : vector<8x8xf32>
    %c2_66 = arith.constant 2 : index
    %c0_67 = arith.constant 0 : index
    %c0_68 = arith.constant 0 : index
    %98 = vector.load %arg3[%c2_66, %c0_67, %c0_68] : memref<4x32x8xbf16, #tpu.memory_space<vmem>>, vector<1x32x8xbf16>
    %99 = vector.shape_cast %98 : vector<1x32x8xbf16> to vector<32x8xbf16>
    %cst_69 = arith.constant dense<0.000000e+00> : vector<8x8xf32>
    %100 = tpu.matmul %1, %99, %cst_69 {dimension_numbers = #tpu.dot_dimension_numbers<[1], [0], [0], [1], [0, 0, 1, 1], [], []>} : vector<8x32xbf16>, vector<32x8xbf16>, vector<8x8xf32> -> vector<8x8xf32>
    %c2_70 = arith.constant 2 : index
    %c0_71 = arith.constant 0 : index
    %c0_72 = arith.constant 0 : index
    %101 = vector.load %arg6[%c2_70, %c0_71, %c0_72] : memref<4x1x8xf32, #tpu.memory_space<vmem>>, vector<1x1x8xf32>
    %102 = vector.shape_cast %101 : vector<1x1x8xf32> to vector<1x8xf32>
    %103 = vector.broadcast %102 : vector<1x8xf32> to vector<8x8xf32>
    %104 = arith.addf %100, %103 : vector<8x8xf32>
    %c2_73 = arith.constant 2 : index
    %c0_74 = arith.constant 0 : index
    %c0_75 = arith.constant 0 : index
    %105 = vector.load %arg4[%c2_73, %c0_74, %c0_75] : memref<4x32x8xbf16, #tpu.memory_space<vmem>>, vector<1x32x8xbf16>
    %106 = vector.shape_cast %105 : vector<1x32x8xbf16> to vector<32x8xbf16>
    %cst_76 = arith.constant dense<0.000000e+00> : vector<8x8xf32>
    %107 = tpu.matmul %1, %106, %cst_76 {dimension_numbers = #tpu.dot_dimension_numbers<[1], [0], [0], [1], [0, 0, 1, 1], [], []>} : vector<8x32xbf16>, vector<32x8xbf16>, vector<8x8xf32> -> vector<8x8xf32>
    %c2_77 = arith.constant 2 : index
    %c0_78 = arith.constant 0 : index
    %c0_79 = arith.constant 0 : index
    %108 = vector.load %arg7[%c2_77, %c0_78, %c0_79] : memref<4x1x8xf32, #tpu.memory_space<vmem>>, vector<1x1x8xf32>
    %109 = vector.shape_cast %108 : vector<1x1x8xf32> to vector<1x8xf32>
    %110 = vector.broadcast %109 : vector<1x8xf32> to vector<8x8xf32>
    %111 = arith.addf %107, %110 : vector<8x8xf32>
    %112 = arith.truncf %97 : vector<8x8xf32> to vector<8x8xbf16>
    %113 = arith.truncf %104 : vector<8x8xf32> to vector<8x8xbf16>
    %cst_80 = arith.constant dense<0.000000e+00> : vector<8x8xf32>
    %114 = tpu.matmul %112, %113, %cst_80 {dimension_numbers = #tpu.dot_dimension_numbers<[1], [1], [0], [0], [0, 0, 1, 0], [], []>} : vector<8x8xbf16>, vector<8x8xbf16>, vector<8x8xf32> -> vector<8x8xf32>
    %cst_81 = arith.constant 0.353553385 : f32
    %115 = vector.broadcast %cst_81 : f32 to vector<8x8xf32>
    %116 = arith.mulf %114, %115 : vector<8x8xf32>
    %cst_82 = arith.constant dense<0xFF800000> : vector<8xf32>
    %117 = vector.multi_reduction <maximumf>, %116, %cst_82 [1] : vector<8x8xf32> to vector<8xf32>
    %118 = vector.shape_cast %117 : vector<8xf32> to vector<8x1xf32>
    %119 = vector.broadcast %118 : vector<8x1xf32> to vector<8x8xf32>
    %120 = arith.subf %116, %119 : vector<8x8xf32>
    %121 = math.exp %120 : vector<8x8xf32>
    %cst_83 = arith.constant dense<0.000000e+00> : vector<8xf32>
    %122 = vector.multi_reduction <add>, %121, %cst_83 [1] : vector<8x8xf32> to vector<8xf32>
    %123 = vector.shape_cast %122 : vector<8xf32> to vector<8x1xf32>
    %124 = tpu.reciprocal %123 {approx = true} : vector<8x1xf32> -> vector<8x1xf32>
    %125 = vector.broadcast %124 : vector<8x1xf32> to vector<8x8xf32>
    %126 = arith.mulf %121, %125 : vector<8x8xf32>
    %127 = arith.truncf %126 : vector<8x8xf32> to vector<8x8xbf16>
    %128 = arith.truncf %111 : vector<8x8xf32> to vector<8x8xbf16>
    %cst_84 = arith.constant dense<0.000000e+00> : vector<8x8xf32>
    %129 = tpu.matmul %127, %128, %cst_84 {dimension_numbers = #tpu.dot_dimension_numbers<[1], [0], [0], [1], [0, 0, 1, 1], [], []>} : vector<8x8xbf16>, vector<8x8xbf16>, vector<8x8xf32> -> vector<8x8xf32>
    %130 = arith.truncf %129 : vector<8x8xf32> to vector<8x8xbf16>
    %c2_85 = arith.constant 2 : index
    %c0_86 = arith.constant 0 : index
    %c0_87 = arith.constant 0 : index
    %131 = vector.load %arg8[%c2_85, %c0_86, %c0_87] : memref<4x8x32xbf16, #tpu.memory_space<vmem>>, vector<1x8x32xbf16>
    %132 = vector.shape_cast %131 : vector<1x8x32xbf16> to vector<8x32xbf16>
    %cst_88 = arith.constant dense<0.000000e+00> : vector<8x32xf32>
    %133 = tpu.matmul %130, %132, %cst_88 {dimension_numbers = #tpu.dot_dimension_numbers<[1], [0], [0], [1], [0, 0, 1, 1], [], []>} : vector<8x8xbf16>, vector<8x32xbf16>, vector<8x32xf32> -> vector<8x32xf32>
    %134 = arith.addf %90, %133 : vector<8x32xf32>
    %c3 = arith.constant 3 : index
    %c0_89 = arith.constant 0 : index
    %c0_90 = arith.constant 0 : index
    %135 = vector.load %arg2[%c3, %c0_89, %c0_90] : memref<4x32x8xbf16, #tpu.memory_space<vmem>>, vector<1x32x8xbf16>
    %136 = vector.shape_cast %135 : vector<1x32x8xbf16> to vector<32x8xbf16>
    %cst_91 = arith.constant dense<0.000000e+00> : vector<8x8xf32>
    %137 = tpu.matmul %1, %136, %cst_91 {dimension_numbers = #tpu.dot_dimension_numbers<[1], [0], [0], [1], [0, 0, 1, 1], [], []>} : vector<8x32xbf16>, vector<32x8xbf16>, vector<8x8xf32> -> vector<8x8xf32>
    %c3_92 = arith.constant 3 : index
    %c0_93 = arith.constant 0 : index
    %c0_94 = arith.constant 0 : index
    %138 = vector.load %arg5[%c3_92, %c0_93, %c0_94] : memref<4x1x8xf32, #tpu.memory_space<vmem>>, vector<1x1x8xf32>
    %139 = vector.shape_cast %138 : vector<1x1x8xf32> to vector<1x8xf32>
    %140 = vector.broadcast %139 : vector<1x8xf32> to vector<8x8xf32>
    %141 = arith.addf %137, %140 : vector<8x8xf32>
    %c3_95 = arith.constant 3 : index
    %c0_96 = arith.constant 0 : index
    %c0_97 = arith.constant 0 : index
    %142 = vector.load %arg3[%c3_95, %c0_96, %c0_97] : memref<4x32x8xbf16, #tpu.memory_space<vmem>>, vector<1x32x8xbf16>
    %143 = vector.shape_cast %142 : vector<1x32x8xbf16> to vector<32x8xbf16>
    %cst_98 = arith.constant dense<0.000000e+00> : vector<8x8xf32>
    %144 = tpu.matmul %1, %143, %cst_98 {dimension_numbers = #tpu.dot_dimension_numbers<[1], [0], [0], [1], [0, 0, 1, 1], [], []>} : vector<8x32xbf16>, vector<32x8xbf16>, vector<8x8xf32> -> vector<8x8xf32>
    %c3_99 = arith.constant 3 : index
    %c0_100 = arith.constant 0 : index
    %c0_101 = arith.constant 0 : index
    %145 = vector.load %arg6[%c3_99, %c0_100, %c0_101] : memref<4x1x8xf32, #tpu.memory_space<vmem>>, vector<1x1x8xf32>
    %146 = vector.shape_cast %145 : vector<1x1x8xf32> to vector<1x8xf32>
    %147 = vector.broadcast %146 : vector<1x8xf32> to vector<8x8xf32>
    %148 = arith.addf %144, %147 : vector<8x8xf32>
    %c3_102 = arith.constant 3 : index
    %c0_103 = arith.constant 0 : index
    %c0_104 = arith.constant 0 : index
    %149 = vector.load %arg4[%c3_102, %c0_103, %c0_104] : memref<4x32x8xbf16, #tpu.memory_space<vmem>>, vector<1x32x8xbf16>
    %150 = vector.shape_cast %149 : vector<1x32x8xbf16> to vector<32x8xbf16>
    %cst_105 = arith.constant dense<0.000000e+00> : vector<8x8xf32>
    %151 = tpu.matmul %1, %150, %cst_105 {dimension_numbers = #tpu.dot_dimension_numbers<[1], [0], [0], [1], [0, 0, 1, 1], [], []>} : vector<8x32xbf16>, vector<32x8xbf16>, vector<8x8xf32> -> vector<8x8xf32>
    %c3_106 = arith.constant 3 : index
    %c0_107 = arith.constant 0 : index
    %c0_108 = arith.constant 0 : index
    %152 = vector.load %arg7[%c3_106, %c0_107, %c0_108] : memref<4x1x8xf32, #tpu.memory_space<vmem>>, vector<1x1x8xf32>
    %153 = vector.shape_cast %152 : vector<1x1x8xf32> to vector<1x8xf32>
    %154 = vector.broadcast %153 : vector<1x8xf32> to vector<8x8xf32>
    %155 = arith.addf %151, %154 : vector<8x8xf32>
    %156 = arith.truncf %141 : vector<8x8xf32> to vector<8x8xbf16>
    %157 = arith.truncf %148 : vector<8x8xf32> to vector<8x8xbf16>
    %cst_109 = arith.constant dense<0.000000e+00> : vector<8x8xf32>
    %158 = tpu.matmul %156, %157, %cst_109 {dimension_numbers = #tpu.dot_dimension_numbers<[1], [1], [0], [0], [0, 0, 1, 0], [], []>} : vector<8x8xbf16>, vector<8x8xbf16>, vector<8x8xf32> -> vector<8x8xf32>
    %cst_110 = arith.constant 0.353553385 : f32
    %159 = vector.broadcast %cst_110 : f32 to vector<8x8xf32>
    %160 = arith.mulf %158, %159 : vector<8x8xf32>
    %cst_111 = arith.constant dense<0xFF800000> : vector<8xf32>
    %161 = vector.multi_reduction <maximumf>, %160, %cst_111 [1] : vector<8x8xf32> to vector<8xf32>
    %162 = vector.shape_cast %161 : vector<8xf32> to vector<8x1xf32>
    %163 = vector.broadcast %162 : vector<8x1xf32> to vector<8x8xf32>
    %164 = arith.subf %160, %163 : vector<8x8xf32>
    %165 = math.exp %164 : vector<8x8xf32>
    %cst_112 = arith.constant dense<0.000000e+00> : vector<8xf32>
    %166 = vector.multi_reduction <add>, %165, %cst_112 [1] : vector<8x8xf32> to vector<8xf32>
    %167 = vector.shape_cast %166 : vector<8xf32> to vector<8x1xf32>
    %168 = tpu.reciprocal %167 {approx = true} : vector<8x1xf32> -> vector<8x1xf32>
    %169 = vector.broadcast %168 : vector<8x1xf32> to vector<8x8xf32>
    %170 = arith.mulf %165, %169 : vector<8x8xf32>
    %171 = arith.truncf %170 : vector<8x8xf32> to vector<8x8xbf16>
    %172 = arith.truncf %155 : vector<8x8xf32> to vector<8x8xbf16>
    %cst_113 = arith.constant dense<0.000000e+00> : vector<8x8xf32>
    %173 = tpu.matmul %171, %172, %cst_113 {dimension_numbers = #tpu.dot_dimension_numbers<[1], [0], [0], [1], [0, 0, 1, 1], [], []>} : vector<8x8xbf16>, vector<8x8xbf16>, vector<8x8xf32> -> vector<8x8xf32>
    %174 = arith.truncf %173 : vector<8x8xf32> to vector<8x8xbf16>
    %c3_114 = arith.constant 3 : index
    %c0_115 = arith.constant 0 : index
    %c0_116 = arith.constant 0 : index
    %175 = vector.load %arg8[%c3_114, %c0_115, %c0_116] : memref<4x8x32xbf16, #tpu.memory_space<vmem>>, vector<1x8x32xbf16>
    %176 = vector.shape_cast %175 : vector<1x8x32xbf16> to vector<8x32xbf16>
    %cst_117 = arith.constant dense<0.000000e+00> : vector<8x32xf32>
    %177 = tpu.matmul %174, %176, %cst_117 {dimension_numbers = #tpu.dot_dimension_numbers<[1], [0], [0], [1], [0, 0, 1, 1], [], []>} : vector<8x8xbf16>, vector<8x32xbf16>, vector<8x32xf32> -> vector<8x32xf32>
    %178 = arith.addf %134, %177 : vector<8x32xf32>
    %179 = arith.addf %0, %178 : vector<8x32xf32>
    %c0_118 = arith.constant 0 : index
    %c0_119 = arith.constant 0 : index
    %180 = vector.load %arg9[%c0_118, %c0_119] : memref<1x32xf32, #tpu.memory_space<vmem>>, vector<1x32xf32>
    %181 = vector.broadcast %180 : vector<1x32xf32> to vector<8x32xf32>
    %182 = arith.addf %179, %181 : vector<8x32xf32>
    %cst_120 = arith.constant dense<0.000000e+00> : vector<8xf32>
    %183 = vector.multi_reduction <add>, %182, %cst_120 [1] : vector<8x32xf32> to vector<8xf32>
    %184 = vector.shape_cast %183 : vector<8xf32> to vector<8x1xf32>
    %cst_121 = arith.constant 3.200000e+01 : f32
    %185 = vector.broadcast %cst_121 : f32 to vector<8x1xf32>
    %186 = arith.divf %184, %185 : vector<8x1xf32>
    %187 = vector.broadcast %186 : vector<8x1xf32> to vector<8x32xf32>
    %188 = arith.subf %182, %187 : vector<8x32xf32>
    %189 = arith.mulf %188, %188 : vector<8x32xf32>
    %cst_122 = arith.constant dense<0.000000e+00> : vector<8xf32>
    %190 = vector.multi_reduction <add>, %189, %cst_122 [1] : vector<8x32xf32> to vector<8xf32>
    %191 = vector.shape_cast %190 : vector<8xf32> to vector<8x1xf32>
    %cst_123 = arith.constant 3.200000e+01 : f32
    %192 = vector.broadcast %cst_123 : f32 to vector<8x1xf32>
    %193 = arith.divf %191, %192 : vector<8x1xf32>
    %194 = vector.broadcast %186 : vector<8x1xf32> to vector<8x32xf32>
    %195 = arith.subf %182, %194 : vector<8x32xf32>
    %cst_124 = arith.constant 9.99999974E-6 : f32
    %196 = vector.broadcast %cst_124 : f32 to vector<8x1xf32>
    %197 = arith.addf %193, %196 : vector<8x1xf32>
    %198 = math.rsqrt %197 : vector<8x1xf32>
    %199 = vector.broadcast %198 : vector<8x1xf32> to vector<8x32xf32>
    %200 = arith.mulf %195, %199 : vector<8x32xf32>
    %c0_125 = arith.constant 0 : index
    %c0_126 = arith.constant 0 : index
    %201 = vector.load %arg10[%c0_125, %c0_126] : memref<1x32xf32, #tpu.memory_space<vmem>>, vector<1x32xf32>
    %202 = vector.broadcast %201 : vector<1x32xf32> to vector<8x32xf32>
    %203 = arith.mulf %200, %202 : vector<8x32xf32>
    %c0_127 = arith.constant 0 : index
    %c0_128 = arith.constant 0 : index
    %204 = vector.load %arg11[%c0_127, %c0_128] : memref<1x32xf32, #tpu.memory_space<vmem>>, vector<1x32xf32>
    %205 = vector.broadcast %204 : vector<1x32xf32> to vector<8x32xf32>
    %206 = arith.addf %203, %205 : vector<8x32xf32>
    %c0_129 = arith.constant 0 : index
    %c0_130 = arith.constant 0 : index
    %207 = vector.load %arg12[%c0_129, %c0_130] : memref<8x32xf32, #tpu.memory_space<vmem>>, vector<8x32xf32>
    tpu.vector_store %arg12[%c0_129, %c0_130], %206 {strides = array<i32>} : memref<8x32xf32, #tpu.memory_space<vmem>>, vector<8x32xf32>,
    return
  }
  func.func @transform_0(%arg0: i32) -> (i32, i32) {
    %c0_i32 = arith.constant 0 : i32
    %c0_i32_0 = arith.constant 0 : i32
    return %arg0, %c0_i32 : i32, i32
  }
  func.func @transform_1(%arg0: i32) -> (i32, i32, i32) {
    %c0_i32 = arith.constant 0 : i32
    %c0_i32_0 = arith.constant 0 : i32
    %c0_i32_1 = arith.constant 0 : i32
    %c0_i32_2 = arith.constant 0 : i32
    return %c0_i32, %c0_i32_0, %c0_i32_1 : i32, i32, i32
  }
  func.func @transform_2(%arg0: i32) -> (i32, i32, i32) {
    %c0_i32 = arith.constant 0 : i32
    %c0_i32_0 = arith.constant 0 : i32
    %c0_i32_1 = arith.constant 0 : i32
    %c0_i32_2 = arith.constant 0 : i32
    return %c0_i32, %c0_i32_0, %c0_i32_1 : i32, i32, i32
  }
  func.func @transform_3(%arg0: i32) -> (i32, i32, i32) {
    %c0_i32 = arith.constant 0 : i32
    %c0_i32_0 = arith.constant 0 : i32
    %c0_i32_1 = arith.constant 0 : i32
    %c0_i32_2 = arith.constant 0 : i32
    return %c0_i32, %c0_i32_0, %c0_i32_1 : i32, i32, i32
  }
  func.func @transform_4(%arg0: i32) -> (i32, i32, i32) {
    %c0_i32 = arith.constant 0 : i32
    %c0_i32_0 = arith.constant 0 : i32
    %c0_i32_1 = arith.constant 0 : i32
    %c0_i32_2 = arith.constant 0 : i32
    return %c0_i32, %c0_i32_0, %c0_i32_1 : i32, i32, i32
  }
  func.func @transform_5(%arg0: i32) -> (i32, i32, i32) {
    %c0_i32 = arith.constant 0 : i32
    %c0_i32_0 = arith.constant 0 : i32
    %c0_i32_1 = arith.constant 0 : i32
    %c0_i32_2 = arith.constant 0 : i32
    return %c0_i32, %c0_i32_0, %c0_i32_1 : i32, i32, i32
  }
  func.func @transform_6(%arg0: i32) -> (i32, i32, i32) {
    %c0_i32 = arith.constant 0 : i32
    %c0_i32_0 = arith.constant 0 : i32
    %c0_i32_1 = arith.constant 0 : i32
    %c0_i32_2 = arith.constant 0 : i32
    return %c0_i32, %c0_i32_0, %c0_i32_1 : i32, i32, i32
  }
  func.func @transform_7(%arg0: i32) -> (i32, i32, i32) {
    %c0_i32 = arith.constant 0 : i32
    %c0_i32_0 = arith.constant 0 : i32
    %c0_i32_1 = arith.constant 0 : i32
    %c0_i32_2 = arith.constant 0 : i32
    return %c0_i32, %c0_i32_0, %c0_i32_1 : i32, i32, i32
  }
  func.func @transform_8(%arg0: i32) -> (i32, i32) {
    %c0_i32 = arith.constant 0 : i32
    %c0_i32_0 = arith.constant 0 : i32
    %c0_i32_1 = arith.constant 0 : i32
    return %c0_i32, %c0_i32_0 : i32, i32
  }
  func.func @transform_9(%arg0: i32) -> (i32, i32) {
    %c0_i32 = arith.constant 0 : i32
    %c0_i32_0 = arith.constant 0 : i32
    %c0_i32_1 = arith.constant 0 : i32
    return %c0_i32, %c0_i32_0 : i32, i32
  }
  func.func @transform_10(%arg0: i32) -> (i32, i32) {
    %c0_i32 = arith.constant 0 : i32
    %c0_i32_0 = arith.constant 0 : i32
    %c0_i32_1 = arith.constant 0 : i32
    return %c0_i32, %c0_i32_0 : i32, i32
  }
  func.func @transform_11(%arg0: i32) -> (i32, i32) {
    %c0_i32 = arith.constant 0 : i32
    %c0_i32_0 = arith.constant 0 : i32
    return %arg0, %c0_i32 : i32, i32
  }
}

module attributes {stable_mosaic.version = 11 : i64} {
  func.func @_ffn_block_kernel(%arg0: i32, %arg1: memref<16x32xf32, #tpu.memory_space<vmem>>, %arg2: memref<32x64xbf16, #tpu.memory_space<vmem>>, %arg3: memref<1x64xf32, #tpu.memory_space<vmem>>, %arg4: memref<64x32xbf16, #tpu.memory_space<vmem>>, %arg5: memref<1x32xf32, #tpu.memory_space<vmem>>, %arg6: memref<1x32xf32, #tpu.memory_space<vmem>>, %arg7: memref<1x32xf32, #tpu.memory_space<vmem>>, %arg8: memref<16x32xf32, #tpu.memory_space<vmem>>) attributes {dimension_semantics = [#tpu.dimension_semantics<parallel>], iteration_bounds = array<i64: 1>, scalar_prefetch = 0 : i64, scratch_operands = 0 : i64, tpu.core_type = #tpu.core_type<tc>, window_params = [{transform_indices = @transform_0, window_bounds = array<i64: 16, 32>}, {pipeline_mode = #tpu.pipeline_mode<synchronous>, transform_indices = @transform_1, window_bounds = array<i64: 32, 64>}, {pipeline_mode = #tpu.pipeline_mode<synchronous>, transform_indices = @transform_2, window_bounds = array<i64: 1, 64>}, {pipeline_mode = #tpu.pipeline_mode<synchronous>, transform_indices = @transform_3, window_bounds = array<i64: 64, 32>}, {pipeline_mode = #tpu.pipeline_mode<synchronous>, transform_indices = @transform_4, window_bounds = array<i64: 1, 32>}, {pipeline_mode = #tpu.pipeline_mode<synchronous>, transform_indices = @transform_5, window_bounds = array<i64: 1, 32>}, {pipeline_mode = #tpu.pipeline_mode<synchronous>, transform_indices = @transform_6, window_bounds = array<i64: 1, 32>}, {transform_indices = @transform_7, window_bounds = array<i64: 16, 32>}]} {
    %c0 = arith.constant 0 : index
    %c0_0 = arith.constant 0 : index
    %0 = vector.load %arg1[%c0, %c0_0] : memref<16x32xf32, #tpu.memory_space<vmem>>, vector<16x32xf32>
    %1 = arith.truncf %0 : vector<16x32xf32> to vector<16x32xbf16>
    %c0_1 = arith.constant 0 : index
    %c0_2 = arith.constant 0 : index
    %2 = vector.load %arg2[%c0_1, %c0_2] : memref<32x64xbf16, #tpu.memory_space<vmem>>, vector<32x64xbf16>
    %cst = arith.constant dense<0.000000e+00> : vector<16x64xf32>
    %3 = tpu.matmul %1, %2, %cst {dimension_numbers = #tpu.dot_dimension_numbers<[1], [0], [0], [1], [0, 0, 1, 1], [], []>} : vector<16x32xbf16>, vector<32x64xbf16>, vector<16x64xf32> -> vector<16x64xf32>
    %c0_3 = arith.constant 0 : index
    %c0_4 = arith.constant 0 : index
    %4 = vector.load %arg3[%c0_3, %c0_4] : memref<1x64xf32, #tpu.memory_space<vmem>>, vector<1x64xf32>
    %5 = vector.broadcast %4 : vector<1x64xf32> to vector<16x64xf32>
    %6 = arith.addf %3, %5 : vector<16x64xf32>
    %cst_5 = arith.constant 0.000000e+00 : f32
    %7 = vector.broadcast %cst_5 : f32 to vector<16x64xf32>
    %8 = arith.maximumf %6, %7 : vector<16x64xf32>
    %9 = arith.truncf %8 : vector<16x64xf32> to vector<16x64xbf16>
    %c0_6 = arith.constant 0 : index
    %c0_7 = arith.constant 0 : index
    %10 = vector.load %arg4[%c0_6, %c0_7] : memref<64x32xbf16, #tpu.memory_space<vmem>>, vector<64x32xbf16>
    %cst_8 = arith.constant dense<0.000000e+00> : vector<16x32xf32>
    %11 = tpu.matmul %9, %10, %cst_8 {dimension_numbers = #tpu.dot_dimension_numbers<[1], [0], [0], [1], [0, 0, 1, 1], [], []>} : vector<16x64xbf16>, vector<64x32xbf16>, vector<16x32xf32> -> vector<16x32xf32>
    %c0_9 = arith.constant 0 : index
    %c0_10 = arith.constant 0 : index
    %12 = vector.load %arg5[%c0_9, %c0_10] : memref<1x32xf32, #tpu.memory_space<vmem>>, vector<1x32xf32>
    %13 = vector.broadcast %12 : vector<1x32xf32> to vector<16x32xf32>
    %14 = arith.addf %11, %13 : vector<16x32xf32>
    %15 = arith.addf %0, %14 : vector<16x32xf32>
    %cst_11 = arith.constant dense<0.000000e+00> : vector<16xf32>
    %16 = vector.multi_reduction <add>, %15, %cst_11 [1] : vector<16x32xf32> to vector<16xf32>
    %17 = vector.shape_cast %16 : vector<16xf32> to vector<16x1xf32>
    %cst_12 = arith.constant 3.200000e+01 : f32
    %18 = vector.broadcast %cst_12 : f32 to vector<16x1xf32>
    %19 = arith.divf %17, %18 : vector<16x1xf32>
    %20 = vector.broadcast %19 : vector<16x1xf32> to vector<16x32xf32>
    %21 = arith.subf %15, %20 : vector<16x32xf32>
    %22 = arith.mulf %21, %21 : vector<16x32xf32>
    %cst_13 = arith.constant dense<0.000000e+00> : vector<16xf32>
    %23 = vector.multi_reduction <add>, %22, %cst_13 [1] : vector<16x32xf32> to vector<16xf32>
    %24 = vector.shape_cast %23 : vector<16xf32> to vector<16x1xf32>
    %cst_14 = arith.constant 3.200000e+01 : f32
    %25 = vector.broadcast %cst_14 : f32 to vector<16x1xf32>
    %26 = arith.divf %24, %25 : vector<16x1xf32>
    %27 = vector.broadcast %19 : vector<16x1xf32> to vector<16x32xf32>
    %28 = arith.subf %15, %27 : vector<16x32xf32>
    %cst_15 = arith.constant 9.99999974E-6 : f32
    %29 = vector.broadcast %cst_15 : f32 to vector<16x1xf32>
    %30 = arith.addf %26, %29 : vector<16x1xf32>
    %31 = math.rsqrt %30 : vector<16x1xf32>
    %32 = vector.broadcast %31 : vector<16x1xf32> to vector<16x32xf32>
    %33 = arith.mulf %28, %32 : vector<16x32xf32>
    %c0_16 = arith.constant 0 : index
    %c0_17 = arith.constant 0 : index
    %34 = vector.load %arg6[%c0_16, %c0_17] : memref<1x32xf32, #tpu.memory_space<vmem>>, vector<1x32xf32>
    %35 = vector.broadcast %34 : vector<1x32xf32> to vector<16x32xf32>
    %36 = arith.mulf %33, %35 : vector<16x32xf32>
    %c0_18 = arith.constant 0 : index
    %c0_19 = arith.constant 0 : index
    %37 = vector.load %arg7[%c0_18, %c0_19] : memref<1x32xf32, #tpu.memory_space<vmem>>, vector<1x32xf32>
    %38 = vector.broadcast %37 : vector<1x32xf32> to vector<16x32xf32>
    %39 = arith.addf %36, %38 : vector<16x32xf32>
    %c0_20 = arith.constant 0 : index
    %c0_21 = arith.constant 0 : index
    %40 = vector.load %arg8[%c0_20, %c0_21] : memref<16x32xf32, #tpu.memory_space<vmem>>, vector<16x32xf32>
    tpu.vector_store %arg8[%c0_20, %c0_21], %39 {strides = array<i32>} : memref<16x32xf32, #tpu.memory_space<vmem>>, vector<16x32xf32>,
    return
  }
  func.func @transform_0(%arg0: i32) -> (i32, i32) {
    %c0_i32 = arith.constant 0 : i32
    %c0_i32_0 = arith.constant 0 : i32
    return %arg0, %c0_i32 : i32, i32
  }
  func.func @transform_1(%arg0: i32) -> (i32, i32) {
    %c0_i32 = arith.constant 0 : i32
    %c0_i32_0 = arith.constant 0 : i32
    %c0_i32_1 = arith.constant 0 : i32
    return %c0_i32, %c0_i32_0 : i32, i32
  }
  func.func @transform_2(%arg0: i32) -> (i32, i32) {
    %c0_i32 = arith.constant 0 : i32
    %c0_i32_0 = arith.constant 0 : i32
    %c0_i32_1 = arith.constant 0 : i32
    return %c0_i32, %c0_i32_0 : i32, i32
  }
  func.func @transform_3(%arg0: i32) -> (i32, i32) {
    %c0_i32 = arith.constant 0 : i32
    %c0_i32_0 = arith.constant 0 : i32
    %c0_i32_1 = arith.constant 0 : i32
    return %c0_i32, %c0_i32_0 : i32, i32
  }
  func.func @transform_4(%arg0: i32) -> (i32, i32) {
    %c0_i32 = arith.constant 0 : i32
    %c0_i32_0 = arith.constant 0 : i32
    %c0_i32_1 = arith.constant 0 : i32
    return %c0_i32, %c0_i32_0 : i32, i32
  }
  func.func @transform_5(%arg0: i32) -> (i32, i32) {
    %c0_i32 = arith.constant 0 : i32
    %c0_i32_0 = arith.constant 0 : i32
    %c0_i32_1 = arith.constant 0 : i32
    return %c0_i32, %c0_i32_0 : i32, i32
  }
  func.func @transform_6(%arg0: i32) -> (i32, i32) {
    %c0_i32 = arith.constant 0 : i32
    %c0_i32_0 = arith.constant 0 : i32
    %c0_i32_1 = arith.constant 0 : i32
    return %c0_i32, %c0_i32_0 : i32, i32
  }
  func.func @transform_7(%arg0: i32) -> (i32, i32) {
    %c0_i32 = arith.constant 0 : i32
    %c0_i32_0 = arith.constant 0 : i32
    return %arg0, %c0_i32 : i32, i32
  }
}

module attributes {stable_mosaic.version = 11 : i64} {
  func.func @_ln_kernel(%arg0: i32, %arg1: memref<16x32xf32, #tpu.memory_space<vmem>>, %arg2: memref<1x32xf32, #tpu.memory_space<vmem>>, %arg3: memref<1x32xf32, #tpu.memory_space<vmem>>, %arg4: memref<16x32xf32, #tpu.memory_space<vmem>>) attributes {dimension_semantics = [#tpu.dimension_semantics<parallel>], iteration_bounds = array<i64: 1>, scalar_prefetch = 0 : i64, scratch_operands = 0 : i64, tpu.core_type = #tpu.core_type<tc>, window_params = [{transform_indices = @transform_0, window_bounds = array<i64: 16, 32>}, {pipeline_mode = #tpu.pipeline_mode<synchronous>, transform_indices = @transform_1, window_bounds = array<i64: 1, 32>}, {pipeline_mode = #tpu.pipeline_mode<synchronous>, transform_indices = @transform_2, window_bounds = array<i64: 1, 32>}, {transform_indices = @transform_3, window_bounds = array<i64: 16, 32>}]} {
    %c0 = arith.constant 0 : index
    %c0_0 = arith.constant 0 : index
    %0 = vector.load %arg1[%c0, %c0_0] : memref<16x32xf32, #tpu.memory_space<vmem>>, vector<16x32xf32>
    %cst = arith.constant dense<0.000000e+00> : vector<16xf32>
    %1 = vector.multi_reduction <add>, %0, %cst [1] : vector<16x32xf32> to vector<16xf32>
    %2 = vector.shape_cast %1 : vector<16xf32> to vector<16x1xf32>
    %cst_1 = arith.constant 3.200000e+01 : f32
    %3 = vector.broadcast %cst_1 : f32 to vector<16x1xf32>
    %4 = arith.divf %2, %3 : vector<16x1xf32>
    %5 = vector.broadcast %4 : vector<16x1xf32> to vector<16x32xf32>
    %6 = arith.subf %0, %5 : vector<16x32xf32>
    %7 = arith.mulf %6, %6 : vector<16x32xf32>
    %cst_2 = arith.constant dense<0.000000e+00> : vector<16xf32>
    %8 = vector.multi_reduction <add>, %7, %cst_2 [1] : vector<16x32xf32> to vector<16xf32>
    %9 = vector.shape_cast %8 : vector<16xf32> to vector<16x1xf32>
    %cst_3 = arith.constant 3.200000e+01 : f32
    %10 = vector.broadcast %cst_3 : f32 to vector<16x1xf32>
    %11 = arith.divf %9, %10 : vector<16x1xf32>
    %12 = vector.broadcast %4 : vector<16x1xf32> to vector<16x32xf32>
    %13 = arith.subf %0, %12 : vector<16x32xf32>
    %cst_4 = arith.constant 9.99999974E-6 : f32
    %14 = vector.broadcast %cst_4 : f32 to vector<16x1xf32>
    %15 = arith.addf %11, %14 : vector<16x1xf32>
    %16 = math.rsqrt %15 : vector<16x1xf32>
    %17 = vector.broadcast %16 : vector<16x1xf32> to vector<16x32xf32>
    %18 = arith.mulf %13, %17 : vector<16x32xf32>
    %c0_5 = arith.constant 0 : index
    %c0_6 = arith.constant 0 : index
    %19 = vector.load %arg2[%c0_5, %c0_6] : memref<1x32xf32, #tpu.memory_space<vmem>>, vector<1x32xf32>
    %20 = vector.broadcast %19 : vector<1x32xf32> to vector<16x32xf32>
    %21 = arith.mulf %18, %20 : vector<16x32xf32>
    %c0_7 = arith.constant 0 : index
    %c0_8 = arith.constant 0 : index
    %22 = vector.load %arg3[%c0_7, %c0_8] : memref<1x32xf32, #tpu.memory_space<vmem>>, vector<1x32xf32>
    %23 = vector.broadcast %22 : vector<1x32xf32> to vector<16x32xf32>
    %24 = arith.addf %21, %23 : vector<16x32xf32>
    %c0_9 = arith.constant 0 : index
    %c0_10 = arith.constant 0 : index
    %25 = vector.load %arg4[%c0_9, %c0_10] : memref<16x32xf32, #tpu.memory_space<vmem>>, vector<16x32xf32>
    tpu.vector_store %arg4[%c0_9, %c0_10], %24 {strides = array<i32>} : memref<16x32xf32, #tpu.memory_space<vmem>>, vector<16x32xf32>,
    return
  }
  func.func @transform_0(%arg0: i32) -> (i32, i32) {
    %c0_i32 = arith.constant 0 : i32
    %c0_i32_0 = arith.constant 0 : i32
    return %arg0, %c0_i32 : i32, i32
  }
  func.func @transform_1(%arg0: i32) -> (i32, i32) {
    %c0_i32 = arith.constant 0 : i32
    %c0_i32_0 = arith.constant 0 : i32
    %c0_i32_1 = arith.constant 0 : i32
    return %c0_i32, %c0_i32_0 : i32, i32
  }
  func.func @transform_2(%arg0: i32) -> (i32, i32) {
    %c0_i32 = arith.constant 0 : i32
    %c0_i32_0 = arith.constant 0 : i32
    %c0_i32_1 = arith.constant 0 : i32
    return %c0_i32, %c0_i32_0 : i32, i32
  }
  func.func @transform_3(%arg0: i32) -> (i32, i32) {
    %c0_i32 = arith.constant 0 : i32
    %c0_i32_0 = arith.constant 0 : i32
    return %arg0, %c0_i32 : i32, i32
  }
}

</mosaic_0001>

<bundles_post_ra>
// kernel: transformer_encoder.9
= control target key start
LH: loop header
LB: loop body
LE: loop exit
PB: predicated region body
PF: predicated region fallthrough
CT: control target
= control target key end

     0   :  { %vm16_vm0 = vcmask 261120   ;;  %s118_s0 = inlined_call_operand.vmem [shape: f32[16,32], index: 0, kind: input, shape index: {}]   ;;  %s119_s1 = inlined_call_operand.vmem [shape: f32[1,32], index: 1, kind: input, shape index: {}]   ;;  %s120_s2 = inlined_call_operand.vmem [shape: f32[1,32], index: 2, kind: input, shape index: {}]   ;;  %s121_s3 = inlined_call_operand.vmem [shape: f32[16,32], index: 3, kind: output, shape index: {}]  }
   0x1   :  { %v14_v0 = vld [vmem:[%s118_s0] sm:$0xff]  ;;  %v15_v1 = vld [vmem:[%s118_s0 + $0x8] sm:$0xff] }
   0x2   :  { %v17_v2 = vsel %vm16_vm0, %v14_v0, 0.0  ;;  %v20_v3 = vsel %vm16_vm0, %v15_v1, 0.0  ;;  %v68_v21 = vld [vmem:[%s119_s1] ss:$0 sm:$0xff] }
   0x3   :  { %18 = vadd.xlane.f32.xlu0 %v17_v2  ;;  %v69_v23 = vld [vmem:[%s120_s2] ss:$0 sm:$0xff] }
   0x7   :  { %21 = vadd.xlane.f32.xlu0 %v20_v3 }
  0x8c   :  { %v19_v4 = vpop.xlane.xlu0 %18 }
  0x8d   :  { %v24_v5 = vmul.f32 0.03125, %v19_v4 }
  0x8f   :  { %v26_v6 = vsub.f32 %v14_v0, %v24_v5 }
  0x90   :  { %v22_v7 = vpop.xlane.xlu0 %21 }
  0x91   :  { %v25_v8 = vmul.f32 0.03125, %v22_v7  ;;  %v28_v9 = vmul.f32 %v26_v6, %v26_v6 }
  0x93   :  { %v27_v10 = vsub.f32 %v15_v1, %v25_v8  ;;  %v30_v11 = vsel %vm16_vm0, %v28_v9, 0.0 }
  0x94   :  { %31 = vadd.xlane.f32.xlu1 %v30_v11 }
  0x95   :  { %v29_v12 = vmul.f32 %v27_v10, %v27_v10 }
  0x97   :  { %v33_v13 = vsel %vm16_vm0, %v29_v12, 0.0 }
  0x98   :  { %34 = vadd.xlane.f32.xlu1 %v33_v13 }
 0x11d   :  { %v32_v14 = vpop.xlane.xlu1 %31 }
 0x11e   :  { %v36_v15 = vmul.f32 0.03125, %v32_v14 }
 0x120   :  { %v38_v16 = vadd.f32 1e-05, %v36_v15 }
 0x121   :  { %v35_v17 = vpop.xlane.xlu1 %34 }
 0x122   :  { %70 = vrsqrt.f32 %v38_v16  ;;  %v37_v18 = vmul.f32 0.03125, %v35_v17 }
 0x124   :  { %v39_v19 = vadd.f32 1e-05, %v37_v18 }
 0x126   :  { %72 = vrsqrt.f32 %v39_v19 }
 0x12f   :  { %v71_v20 = vpop.eup %70 }
 0x130   :  { %v42_v22 = vmul.f32 %v71_v20, %v26_v6 }
 0x132   :  { %v51_v24 = vmul.f32 %v68_v21, %v42_v22 }
 0x133   :  { %v73_v25 = vpop.eup %72 }
 0x134   :  { %v60_v26 = vadd.f32 %v69_v23, %v51_v24  ;;  %v43_v27 = vmul.f32 %v73_v25, %v27_v10 }
 0x136   :  { %62 = vst.msk [vmem:[%s121_s3] sm:$0xff] %vm16_vm0, %v60_v26  ;;  %v52_v28 = vmul.f32 %v68_v21, %v43_v27 }
 0x138   :  { %v61_v29 = vadd.f32 %v69_v23, %v52_v28 }
 0x13a   :  { %63 = vst.msk [vmem:[%s121_s3 + $0x8] sm:$0xff] %vm16_vm0, %v61_v29 }

// kernel: transformer_encoder.6
= control target key start
LH: loop header
LB: loop body
LE: loop exit
PB: predicated region body
PF: predicated region fallthrough
CT: control target
= control target key end

     0   :  { %v290_v0 = vmov 0.0   ;;  %vm291_vm0 = vmmov 0   ;;  %vm53_vm1 = vcmask 261120   ;;  %vm140_vm2 = vcmask 523264   ;;  %s381_s1 = inlined_call_operand.vmem [shape: bf16[32,64], index: 1, kind: input, shape index: {}]   ;;  %s382_s0 = inlined_call_operand.vmem [shape: f32[16,32], index: 0, kind: input, shape index: {}]   ;;  %s383_s3 = inlined_call_operand.vmem [shape: bf16[64,32], index: 3, kind: input, shape index: {}]   ;;  %s384_s2 = inlined_call_operand.vmem [shape: f32[1,64], index: 2, kind: input, shape index: {}]   ;;  %s385_s4 = inlined_call_operand.vmem [shape: f32[1,32], index: 4, kind: input, shape index: {}]   ;;  %s386_s5 = inlined_call_operand.vmem [shape: f32[1,32], index: 5, kind: input, shape index: {}]   ;;  %s387_s6 = inlined_call_operand.vmem [shape: f32[1,32], index: 6, kind: input, shape index: {}]   ;;  %s388_s7 = inlined_call_operand.vmem [shape: f32[16,32], index: 7, kind: output, shape index: {}]  }
   0x1   :  { %258 = vmatprep.subr.bf16.mxu0 %v290_v0  ;;  %v280_v1 = vld [vmem:[%s381_s1 + $0x8] sm:$0xff]   ;;  %262 = vmatprep.mubr.msk.bf16.mxu0 %vm291_vm0, %v290_v0  ;;  %v281_v2 = vld [vmem:[%s381_s1] sm:$0xff]   ;;  %v282_v5 = vld [vmem:[%s383_s3 + $0x18] sm:$0xff]  }
   0x2   :  { %266 = vmatprep.subr.bf16.mxu1 %v290_v0  ;;  %274 = vmatprep.mubr.msk.bf16.mxu1 %vm291_vm0, %v290_v0  ;;  %v27_v3 = vld [vmem:[%s382_s0] sm:$0xff]  ;;  %v28_v4 = vld [vmem:[%s382_s0 + $0x8] sm:$0xff]  ;;  %v283_v7 = vld [vmem:[%s383_s3 + $0x10] sm:$0xff]  }
   0x3   :  { %259 = vmatpush3.bf16.msra.mxu0 %v280_v1  ;;  %v29_v6 = vpack.c.bf16 %v28_v4, %v27_v3  ;;  %267 = vmatpush3.bf16.msra.mxu1 %v282_v5  ;;  %v284_v8 = vld [vmem:[%s383_s3 + $0x8] sm:$0xff]   ;;  %v285_v9 = vld [vmem:[%s383_s3] sm:$0xff]  }
   0x4   :  { %260 = vmatprep.subr.bf16.mxu0 %v290_v0  ;;  %268 = vmatprep.subr.bf16.mxu1 %v290_v0  ;;  %v238_v10 = vld [vmem:[%s384_s2] ss:$0 sm:$0xff] }
   0x5   :  { %v242_v20 = vld [vmem:[%s385_s4] ss:$0 sm:$0xff] }
   0x6   :  { %v248_v48 = vld [vmem:[%s386_s5] ss:$0 sm:$0xff] }
   0x7   :  { %261 = vmatpush3.bf16.msra.mxu0 %v281_v2  ;;  %269 = vmatpush3.bf16.msra.mxu1 %v283_v7  ;;  %v249_v50 = vld [vmem:[%s387_s6] ss:$0 sm:$0xff] }
   0x8   :  { %270 = vmatprep.subr.bf16.mxu1 %v290_v0 }
   0xa   :  { %263 = vmatmul.mubr.msk.bf16.vlgmr.msra.gmra.mxu0 %vm53_vm1, %v29_v6 }
   0xb   :  { %271 = vmatpush3.bf16.msra.mxu1 %v284_v8 }
   0xc   :  { %272 = vmatprep.subr.bf16.mxu1 %v290_v0 }
   0xf   :  { %273 = vmatpush3.bf16.msra.mxu1 %v285_v9 }
  0xca   :  { %v91_v11 = vpop.f32.mrf.mxu0 }
  0xcb   :  { %v92_v13 = vadd.f32 %v238_v10, %v91_v11 }
  0xcc   :  { %v264_v12 = vpop.f32.mrf.mxu0 }
  0xcd   :  { %v98_v17 = vmax.f32 %v92_v13, 0.0 }
  0xce   :  { %v94_v14 = vpop.f32.mrf.mxu0 }
  0xcf   :  { %v95_v15 = vadd.f32 %v238_v10, %v94_v14 }
  0xd0   :  { %v265_v16 = vpop.f32.mrf.mxu0 }
  0xd1   :  { %v99_v18 = vmax.f32 %v95_v15, 0.0 }
  0xd3   :  { %v100_v19 = vpack.c.bf16 %v99_v18, %v98_v17 }
  0xd5   :  { %275 = vmatmul.mubr.msk.bf16.vlgmr.msra.gmra.mxu1 %vm140_vm2, %v100_v19 }
 0x195   :  { %v178_v21 = vpop.f32.mrf.mxu1 }
 0x196   :  { %v179_v22 = vadd.f32 %v242_v20, %v178_v21 }
 0x197   :  { %v276_v23 = vpop.f32.mrf.mxu1 }
 0x198   :  { %v185_v24 = vadd.f32 %v179_v22, %v27_v3 }
 0x199   :  { %v181_v25 = vpop.f32.mrf.mxu1 }
 0x19a   :  { %v182_v26 = vadd.f32 %v242_v20, %v181_v25  ;;  %v187_v27 = vsel %vm53_vm1, %v185_v24, 0.0 }
 0x19b   :  { %188 = vadd.xlane.f32.xlu0 %v187_v27  ;;  %v277_v28 = vpop.f32.mrf.mxu1 }
 0x19c   :  { %v186_v29 = vadd.f32 %v182_v26, %v28_v4 }
 0x19e   :  { %v190_v30 = vsel %vm53_vm1, %v186_v29, 0.0 }
 0x19f   :  { %191 = vadd.xlane.f32.xlu0 %v190_v30 }
 0x224   :  { %v189_v31 = vpop.xlane.xlu0 %188 }
 0x225   :  { %v194_v32 = vmul.f32 0.03125, %v189_v31 }
 0x227   :  { %v196_v33 = vsub.f32 %v185_v24, %v194_v32 }
 0x228   :  { %v192_v34 = vpop.xlane.xlu0 %191 }
 0x229   :  { %v195_v35 = vmul.f32 0.03125, %v192_v34  ;;  %v198_v36 = vmul.f32 %v196_v33, %v196_v33 }
 0x22b   :  { %v197_v37 = vsub.f32 %v186_v29, %v195_v35  ;;  %v200_v38 = vsel %vm53_vm1, %v198_v36, 0.0 }
 0x22c   :  { %201 = vadd.xlane.f32.xlu1 %v200_v38 }
 0x22d   :  { %v199_v39 = vmul.f32 %v197_v37, %v197_v37 }
 0x22f   :  { %v203_v40 = vsel %vm53_vm1, %v199_v39, 0.0 }
 0x230   :  { %204 = vadd.xlane.f32.xlu1 %v203_v40 }
 0x2b5   :  { %v202_v41 = vpop.xlane.xlu1 %201 }
 0x2b6   :  { %v206_v42 = vmul.f32 0.03125, %v202_v41 }
 0x2b8   :  { %v208_v43 = vadd.f32 1e-05, %v206_v42 }
 0x2b9   :  { %v205_v44 = vpop.xlane.xlu1 %204 }
 0x2ba   :  { %286 = vrsqrt.f32 %v208_v43  ;;  %v207_v45 = vmul.f32 0.03125, %v205_v44 }
 0x2bc   :  { %v209_v46 = vadd.f32 1e-05, %v207_v45 }
 0x2be   :  { %288 = vrsqrt.f32 %v209_v46 }
 0x2c7   :  { %v287_v47 = vpop.eup %286 }
 0x2c8   :  { %v212_v49 = vmul.f32 %v287_v47, %v196_v33 }
 0x2ca   :  { %v221_v51 = vmul.f32 %v248_v48, %v212_v49 }
 0x2cb   :  { %v289_v52 = vpop.eup %288 }
 0x2cc   :  { %v230_v53 = vadd.f32 %v249_v50, %v221_v51  ;;  %v213_v54 = vmul.f32 %v289_v52, %v197_v37 }
 0x2ce   :  { %232 = vst.msk [vmem:[%s388_s7] sm:$0xff] %vm53_vm1, %v230_v53  ;;  %v222_v55 = vmul.f32 %v248_v48, %v213_v54 }
 0x2d0   :  { %v231_v56 = vadd.f32 %v249_v50, %v222_v55 }
 0x2d2   :  { %233 = vst.msk [vmem:[%s388_s7 + $0x8] sm:$0xff] %vm53_vm1, %v231_v56 }

// kernel: transformer_encoder.5
= control target key start
LH: loop header
LB: loop body
LE: loop exit
PB: predicated region body
PF: predicated region fallthrough
CT: control target
= control target key end

     0   :  { %s2357_s17 = smov 0   ;;  %s2673_s0 = inlined_call_operand.vmem [shape: f32[16,32], index: 0, kind: input, shape index: {}]   ;;  %s2674_s1 = inlined_call_operand.vmem [shape: bf16[4,32,8], index: 1, kind: input, shape index: {}]   ;;  %s2675_s2 = inlined_call_operand.vmem [shape: bf16[4,32,8], index: 2, kind: input, shape index: {}]   ;;  %s2676_s3 = inlined_call_operand.vmem [shape: bf16[4,32,8], index: 3, kind: input, shape index: {}]   ;;  %s2677_s4 = inlined_call_operand.vmem [shape: f32[4,1,8], index: 4, kind: input, shape index: {}]   ;;  %s2678_s5 = inlined_call_operand.vmem [shape: f32[4,1,8], index: 5, kind: input, shape index: {}]   ;;  %s2679_s6 = inlined_call_operand.vmem [shape: f32[4,1,8], index: 6, kind: input, shape index: {}]   ;;  %s2680_s7 = inlined_call_operand.vmem [shape: bf16[4,8,32], index: 7, kind: input, shape index: {}]   ;;  %s2681_s8 = inlined_call_operand.vmem [shape: f32[1,32], index: 8, kind: input, shape index: {}]   ;;  %s2682_s9 = inlined_call_operand.vmem [shape: f32[1,32], index: 9, kind: input, shape index: {}]   ;;  %s2683_s10 = inlined_call_operand.vmem [shape: f32[1,32], index: 10, kind: input, shape index: {}]   ;;  %s2684_s11 = inlined_call_operand.vmem [shape: f32[16,32], index: 11, kind: output, shape index: {}]  }
   0x1 LB: > { %s1887_s18 = sadd.s32 4294967295, %s2293_s17   ;;  %p1891_p0 = scmp.ge.s32.totalorder %s2293_s17, 1  ;;  %s2293_s17 = sphi %s2357_s17, %s21_s17  }
   0x2   : > { %p336_p1 = scmp.lt.s32.totalorder %s2293_s17, 3 }
   0x4   : > { %p337_p2 = pnand %p1891_p0, %p336_p1 }
   0x5   : > { %p374_p3 = scmp.lt.s32.totalorder (!%p337_p2), %s1887_s18, 1 }
   0x6   : > { %340 = sbr.rel (%p337_p2) target bundleno = 3985 (0xf91), region = 64 }
   0xb   : > { %v2245_v0 = vld [vmem:[%s2675_s2 + $0x8] sm:$0xff]   ;;  %v2295_v1 = vmov 0.0   ;;  %v2247_v3 = vld [vmem:[%s2675_s2] sm:$0xff]   ;;  %vm2296_vm0 = vmmov 0   ;;  %s2686_s18 = smov (!%p374_p3, %s1887_s18), 1  ;;  %vm408_vm1 = vcmask 261120  }
   0xc   : > { %2075 = vmatprep.subr.bf16.mxu1 %v2295_v1  ;;  %2067 = vmatprep.subr.bf16.mxu0 %v2295_v1  ;;  %v2246_v2 = vld [vmem:[%s2674_s1 + $0x8] sm:$0xff]   ;;  %v2248_v4 = vld [vmem:[%s2674_s1] sm:$0xff]   ;;  %s1892_s27 = sshll.u32 %s2686_s18, 3  ;;  %vm580_vm2 = vcmask 64512   ;;  %vm644_vm3 = vcmask 1043456   ;;  %v2252_v43 = vld [vmem:[%s2674_s1 + $0x18] sm:$0xff]  }
   0xd   : > { %2076 = vmatpush3.bf16.msra.mxu1 %v2245_v0  ;;  %2079 = vmatprep.mubr.msk.bf16.mxu1 %vm2296_vm0, %v2295_v1  ;;  %s377_s30 = scalar_lea.vmem %s2673_s0, %s1892_s27  ;;  %v1898_v7 = vld [vmem:[%s2678_s5] ss:$0 sm:$0xff]  ;;  %v2249_v22 = vld [vmem:[%s2676_s3 + $0x8] sm:$0xff]   ;;  %v2254_v44 = vld [vmem:[%s2674_s1 + $0x10] sm:$0xff]   ;;  %s381_s12 = scalar_lea.vmem %s2684_s11, %s1892_s27 }
   0xe   : > { %2068 = vmatpush3.bf16.msra.mxu0 %v2246_v2  ;;  %2077 = vmatprep.subr.bf16.mxu1 %v2295_v1  ;;  %v2394_v5 = vld [vmem:[%s377_s30] sm:$0xff]  ;;  %v2251_v48 = vld [vmem:[%s2675_s2 + $0x18] sm:$0xff]   ;;  %v2253_v50 = vld [vmem:[%s2675_s2 + $0x10] sm:$0xff]  }
   0xf   : > { %2069 = vmatprep.subr.bf16.mxu0 %v2295_v1  ;;  %2071 = vmatprep.mubr.msk.bf16.mxu0 %vm2296_vm0, %v2295_v1  ;;  %v2399_v6 = vpack.c.bf16 %v2394_v5, %v2394_v5  ;;  %v1894_v11 = vld [vmem:[%s2677_s4] ss:$0 sm:$0xff]  ;;  %v1922_v59 = vld [vmem:[%s2678_s5 + $0x1] ss:$0 sm:$0xff] }
  0x10   : > { %v2250_v23 = vld [vmem:[%s2676_s3] sm:$0xff]  }
  0x11   : > { %2078 = vmatpush3.bf16.msra.mxu1 %v2247_v3  ;;  %v1902_v35 = vld [vmem:[%s2679_s6] ss:$0 sm:$0xff]  ;;  %v1913_v62 = vld [vmem:[%s2677_s4 + $0x1] ss:$0 sm:$0xff] }
  0x12   : > { %2070 = vmatpush3.bf16.msra.mxu0 %v2248_v4  ;;  %2091 = vmatprep.subr.bf16.mxu1 %v2295_v1 }
  0x13   : > { %2083 = vmatprep.subr.bf16.mxu0 %v2295_v1 }
  0x14   : > { %2080 = vmatmul.mubr.msk.bf16.vlgmr.msra.gmra.mxu1 %vm408_vm1, %v2399_v6 }
  0x15   : > { %2072 = vmatmul.mubr.msk.bf16.vlgmr.msra.gmra.mxu0 %vm408_vm1, %v2399_v6  ;;  %2093 = vmatprep.mubr.msk.bf16.mxu1 %vm2296_vm0, %v2295_v1 }
  0x16   : > { %2087 = vmatprep.mubr.msk.bf16.mxu0 %vm2296_vm0, %v2295_v1  ;;  %2084 = vmatpush3.bf16.msra.mxu0 %v2249_v22 }
  0x17   : > { %2085 = vmatprep.subr.bf16.mxu0 %v2295_v1 }
  0x1a   : > { %2086 = vmatpush3.bf16.msra.mxu0 %v2250_v23 }
  0x1b   : > { %2097 = vmatprep.subr.bf16.mxu0 %v2295_v1 }
  0x1d   : > { %2088 = vmatmul.mubr.msk.bf16.vlgmr.msra.gmra.mxu0 %vm408_vm1, %v2399_v6 }
  0x1e   : > { %2099 = vmatprep.mubr.msk.bf16.mxu0 %vm2296_vm0, %v2295_v1 }
  0xd4   : > { %v509_v8 = vpop.f32.mrf.mxu1 }
  0xd5   : > { %v446_v9 = vpop.f32.mrf.mxu0  ;;  %v510_v10 = vadd.f32 %v1898_v7, %v509_v8 }
  0xd6   : > { %v2081_v12 = vpop.f32.mrf.mxu1  ;;  %v447_v18 = vadd.f32 %v1894_v11, %v446_v9  ;;  %v2255_v9 = vld [vmem:[%s2676_s3 + $0x18] sm:$0xff]  }
  0xd7   : > { %v2073_v13 = vpop.f32.mrf.mxu0  ;;  %v579_v14 = vpack.c.bf16 %v510_v10, %v510_v10  ;;  %v2256_v10 = vld [vmem:[%s2676_s3 + $0x10] sm:$0xff]  }
  0xd8   : > { %v512_v15 = vpop.f32.mrf.mxu1  ;;  %v578_v21 = vpack.c.bf16 %v447_v18, %v447_v18 }
  0xd9   : > { %v449_v16 = vpop.f32.mrf.mxu0  ;;  %v585_v17 = vsel %vm580_vm2, %v579_v14, 0 }
  0xda   : > { %v2082_v19 = vpop.f32.mrf.mxu1  ;;  %2092 = vmatpush3.bf16.xpose.msra.mxu1 %v585_v17  ;;  %v1931_v17 = vld [vmem:[%s2679_s6 + $0x1] ss:$0 sm:$0xff] }
  0xdb   : > { %v2074_v20 = vpop.f32.mrf.mxu0  ;;  %2103 = vmatprep.subr.bf16.mxu1 %v2295_v1 }
  0xdd   : > { %v572_v36 = vpop.f32.mrf.mxu0 }
  0xde   : > { %v573_v37 = vadd.f32 %v1902_v35, %v572_v36 }
  0xdf   : > { %v2089_v38 = vpop.f32.mrf.mxu0 }
  0xe0   : > { %v640_v39 = vpack.c.bf16 %v573_v37, %v573_v37  ;;  %v2257_v38 = vld [vmem:[%s2675_s2 + $0x28] sm:$0xff]  }
  0xe1   : > { %2094 = vmatmul.mubr.msk.bf16.vlgmr.msra.gmra.mxu1 %vm580_vm2, %v578_v21  ;;  %v575_v40 = vpop.f32.mrf.mxu0 }
  0xe2   : > { %2107 = vmatprep.mubr.msk.bf16.mxu1 %vm2296_vm0, %v2295_v1  ;;  %v646_v41 = vsel %vm644_vm3, %v640_v39, 0  ;;  %2104 = vmatpush3.bf16.msra.mxu1 %v2252_v43  ;;  %v2258_v40 = vld [vmem:[%s2675_s2 + $0x20] sm:$0xff]  }
  0xe3   : > { %v2090_v42 = vpop.f32.mrf.mxu0  ;;  %2098 = vmatpush3.bf16.msra.mxu0 %v646_v41  ;;  %2105 = vmatprep.subr.bf16.mxu1 %v2295_v1 }
  0xe4   : > { %2111 = vmatprep.subr.bf16.mxu0 %v2295_v1  ;;  %v2259_v42 = vld [vmem:[%s2674_s1 + $0x28] sm:$0xff]  }
  0xe6   : > { %2106 = vmatpush3.bf16.msra.mxu1 %v2254_v44 }
  0xe7   : > { %2119 = vmatprep.subr.bf16.mxu1 %v2295_v1 }
  0xe9   : > { %2108 = vmatmul.mubr.msk.bf16.vlgmr.msra.gmra.mxu1 %vm408_vm1, %v2399_v6 }
  0xea   : > { %2123 = vmatprep.mubr.msk.bf16.mxu1 %vm2296_vm0, %v2295_v1  ;;  %2120 = vmatpush3.bf16.msra.mxu1 %v2255_v9 }
  0xeb   : > { %2121 = vmatprep.subr.bf16.mxu1 %v2295_v1 }
  0xee   : > { %2122 = vmatpush3.bf16.msra.mxu1 %v2256_v10  ;;  %v2261_v10 = vld [vmem:[%s2676_s3 + $0x28] sm:$0xff]  }
  0xef   : > { %2133 = vmatprep.subr.bf16.mxu1 %v2295_v1 }
  0xf1   : > { %2124 = vmatmul.mubr.msk.bf16.vlgmr.msra.gmra.mxu1 %vm408_vm1, %v2399_v6 }
  0xf2   : > { %2135 = vmatprep.mubr.msk.bf16.mxu1 %vm2296_vm0, %v2295_v1 }
 0x1a1   : > { %v621_v24 = vpop.f32.mrf.mxu1 }
 0x1a2   : > { %v627_v25 = vmul.f32 0.35355338, %v621_v24 }
 0x1a3   : > { %v2095_v26 = vpop.f32.mrf.mxu1 }
 0x1a4   : > { %v628_v27 = vsel %vm580_vm2, %v627_v25, -inf }
 0x1a5   : > { %629 = vmax.xlane.f32.xlu0 %v628_v27  ;;  %v624_v28 = vpop.f32.mrf.mxu1 }
 0x1a7   : > { %v2096_v29 = vpop.f32.mrf.mxu1 }
 0x1a9   : > { %v749_v51 = vpop.f32.mrf.mxu1 }
 0x1aa   : > { %v750_v4 = vadd.f32 %v1913_v62, %v749_v51 }
 0x1ab   : > { %v2109_v52 = vpop.f32.mrf.mxu1 }
 0x1ac   : > { %v885_v8 = vpack.c.bf16 %v750_v4, %v750_v4  ;;  %v1954_v52 = vld [vmem:[%s2678_s5 + $0x2] ss:$0 sm:$0xff] }
 0x1ad   : > { %v752_v53 = vpop.f32.mrf.mxu1 }
 0x1af   : > { %v2110_v54 = vpop.f32.mrf.mxu1 }
 0x1b1   : > { %v879_v18 = vpop.f32.mrf.mxu1 }
 0x1b2   : > { %v880_v19 = vadd.f32 %v1931_v17, %v879_v18 }
 0x1b3   : > { %v2125_v20 = vpop.f32.mrf.mxu1 }
 0x1b4   : > { %v946_v21 = vpack.c.bf16 %v880_v19, %v880_v19 }
 0x1b5   : > { %v882_v22 = vpop.f32.mrf.mxu1 }
 0x1b6   : > { %v951_v23 = vsel %vm644_vm3, %v946_v21, 0 }
 0x1b7   : > { %v2126_v24 = vpop.f32.mrf.mxu1  ;;  %2134 = vmatpush3.bf16.msra.mxu1 %v951_v23  ;;  %v1963_v23 = vld [vmem:[%s2679_s6 + $0x2] ss:$0 sm:$0xff] }
 0x1b8   : > { %2145 = vmatprep.subr.bf16.mxu1 %v2295_v1 }
 0x22e   : > { %v630_v30 = vpop.xlane.xlu0 %629 }
 0x22f   : > { %v631_v31 = vsub.f32 %v627_v25, %v630_v30  ;;  %v1937_v30 = vld [vmem:[%s2680_s7 + $0x4] sm:$0xf] }
 0x231   : > { %v632_v32 = vmul.f32 1.442695, %v631_v31  ;;  %v1000_v31 = vsel %vm644_vm3, %v1937_v30, 0 }
 0x233   : > { %2269 = vpow2.f32 %v632_v32 }
 0x240   : > { %v2270_v33 = vpop.eup %2269 }
 0x241   : > { %v634_v34 = vsel %vm580_vm2, %v2270_v33, 0.0 }
 0x242   : > { %635 = vadd.xlane.f32.xlu0 %v634_v34  ;;  %v689_v34 = vld [vmem:[%s2680_s7] sm:$0xf] }
 0x243   : > { %v1046_v37 = vsel %vm644_vm3, %v689_v34, 0 }
 0x2cb   : > { %v636_v45 = vpop.xlane.xlu0 %635 }
 0x2cc   : > { %2271 = vrcp.f32 %v636_v45 }
 0x2d9   : > { %v2272_v46 = vpop.eup %2271 }
 0x2da   : > { %v638_v47 = vmul.f32 %v2272_v46, %v2270_v33  ;;  %v2260_v46 = vld [vmem:[%s2674_s1 + $0x20] sm:$0xff]  }
 0x2dc   : > { %v639_v49 = vpack.c.bf16 %v638_v47, %v638_v47 }
 0x2de   : > { %2100 = vmatmul.mubr.msk.bf16.vlgmr.msra.gmra.mxu0 %vm580_vm2, %v639_v49 }
 0x2df   : > { %2112 = vmatpush3.bf16.msra.mxu0 %v2251_v48  ;;  %2115 = vmatprep.mubr.msk.bf16.mxu0 %vm2296_vm0, %v2295_v1 }
 0x2e0   : > { %2113 = vmatprep.subr.bf16.mxu0 %v2295_v1 }
 0x2e3   : > { %2114 = vmatpush3.bf16.msra.mxu0 %v2253_v50 }
 0x2e4   : > { %2127 = vmatprep.subr.bf16.mxu0 %v2295_v1 }
 0x2e6   : > { %2116 = vmatmul.mubr.msk.bf16.vlgmr.msra.gmra.mxu0 %vm408_vm1, %v2399_v6 }
 0x2e7   : > { %2129 = vmatprep.mubr.msk.bf16.mxu0 %vm2296_vm0, %v2295_v1 }
 0x39e   : > { %v2466_v55 = vpop.f32.mrf.mxu0 }
 0x39f   : > { %v688_v39 = vpack.c.bf16 %v2466_v55, %v2466_v55 }
 0x3a0   : > { %v2101_v56 = vpop.f32.mrf.mxu0 }
 0x3a2   : > { %v685_v57 = vpop.f32.mrf.mxu0 }
 0x3a4   : > { %v2102_v58 = vpop.f32.mrf.mxu0 }
 0x3a6   : > { %v814_v60 = vpop.f32.mrf.mxu0 }
 0x3a7   : > { %v815_v61 = vadd.f32 %v1922_v59, %v814_v60 }
 0x3a8   : > { %v2117_v63 = vpop.f32.mrf.mxu0 }
 0x3a9   : > { %v886_v0 = vpack.c.bf16 %v815_v61, %v815_v61 }
 0x3aa   : > { %v817_v2 = vpop.f32.mrf.mxu0 }
 0x3ab   : > { %v891_v3 = vsel %vm580_vm2, %v886_v0, 0  ;;  %v1945_v0 = vld [vmem:[%s2677_s4 + $0x2] ss:$0 sm:$0xff] }
 0x3ac   : > { %v2118_v7 = vpop.f32.mrf.mxu0  ;;  %2128 = vmatpush3.bf16.xpose.msra.mxu0 %v891_v3 }
 0x3ad   : > { %2139 = vmatprep.subr.bf16.mxu0 %v2295_v1 }
 0x3b3   : > { %2130 = vmatmul.mubr.msk.bf16.vlgmr.msra.gmra.mxu0 %vm580_vm2, %v885_v8 }
 0x3b4   : > { %2141 = vmatprep.mubr.msk.bf16.mxu0 %vm2296_vm0, %v2295_v1  ;;  %2140 = vmatpush3.bf16.msra.mxu0 %v1000_v31  ;;  %v1969_v31 = vld [vmem:[%s2680_s7 + $0x8] sm:$0xf] }
 0x3b5   : > { %2151 = vmatprep.subr.bf16.mxu0 %v2295_v1 }
 0x473   : > { %v927_v11 = vpop.f32.mrf.mxu0 }
 0x474   : > { %v933_v12 = vmul.f32 0.35355338, %v927_v11  ;;  %v2262_v11 = vld [vmem:[%s2676_s3 + $0x20] sm:$0xff]  }
 0x475   : > { %v2131_v13 = vpop.f32.mrf.mxu0 }
 0x476   : > { %v934_v14 = vsel %vm580_vm2, %v933_v12, -inf }
 0x477   : > { %935 = vmax.xlane.f32.xlu1 %v934_v14  ;;  %v930_v15 = vpop.f32.mrf.mxu0 }
 0x479   : > { %v2132_v16 = vpop.f32.mrf.mxu0 }
 0x500   : > { %v936_v25 = vpop.xlane.xlu1 %935 }
 0x501   : > { %v937_v26 = vsub.f32 %v933_v12, %v936_v25 }
 0x503   : > { %v938_v27 = vmul.f32 1.442695, %v937_v26 }
 0x505   : > { %2273 = vpow2.f32 %v938_v27 }
 0x512   : > { %v2274_v28 = vpop.eup %2273 }
 0x513   : > { %v940_v29 = vsel %vm580_vm2, %v2274_v28, 0.0 }
 0x514   : > { %941 = vadd.xlane.f32.xlu1 %v940_v29 }
 0x59d   : > { %v942_v32 = vpop.xlane.xlu1 %941 }
 0x59e   : > { %2275 = vrcp.f32 %v942_v32  ;;  %v1398_v32 = vsel %vm644_vm3, %v1969_v31, 0 }
 0x5ab   : > { %v2276_v33 = vpop.eup %2275 }
 0x5ac   : > { %v944_v35 = vmul.f32 %v2276_v33, %v2274_v28 }
 0x5ae   : > { %v945_v36 = vpack.c.bf16 %v944_v35, %v944_v35 }
 0x5b0   : > { %2136 = vmatmul.mubr.msk.bf16.vlgmr.msra.gmra.mxu1 %vm580_vm2, %v945_v36 }
 0x5b1   : > { %2146 = vmatpush3.bf16.msra.mxu1 %v1046_v37  ;;  %2147 = vmatprep.mubr.msk.bf16.mxu1 %vm2296_vm0, %v2295_v1  ;;  %v2264_v37 = vld [vmem:[%s2674_s1 + $0x38] sm:$0xff]  }
 0x5b2   : > { %2159 = vmatprep.subr.bf16.mxu1 %v2295_v1 }
 0x5b8   : > { %2148 = vmatmul.mubr.msk.bf16.vlgmr.msra.gmra.mxu1 %vm580_vm2, %v688_v39 }
 0x5b9   : > { %2160 = vmatpush3.bf16.msra.mxu1 %v2257_v38  ;;  %2163 = vmatprep.mubr.msk.bf16.mxu1 %vm2296_vm0, %v2295_v1  ;;  %v2266_v38 = vld [vmem:[%s2674_s1 + $0x30] sm:$0xff]  }
 0x5ba   : > { %2161 = vmatprep.subr.bf16.mxu1 %v2295_v1 }
 0x5bd   : > { %2162 = vmatpush3.bf16.msra.mxu1 %v2258_v40  ;;  %v2263_v40 = vld [vmem:[%s2675_s2 + $0x38] sm:$0xff]  }
 0x5be   : > { %2175 = vmatprep.subr.bf16.mxu1 %v2295_v1 }
 0x5c0   : > { %2164 = vmatmul.mubr.msk.bf16.vlgmr.msra.gmra.mxu1 %vm408_vm1, %v2399_v6 }
 0x5c1   : > { %2177 = vmatprep.mubr.msk.bf16.mxu1 %vm2296_vm0, %v2295_v1 }
 0x670   : > { %v987_v41 = vpop.f32.mrf.mxu1 }
 0x671   : > { %v993_v43 = vpack.c.bf16 %v987_v41, %v987_v41 }
 0x672   : > { %v2137_v44 = vpop.f32.mrf.mxu1 }
 0x673   : > { %2142 = vmatmul.mubr.msk.bf16.vlgmr.msra.gmra.mxu0 %vm580_vm2, %v993_v43  ;;  %v2265_v44 = vld [vmem:[%s2675_s2 + $0x30] sm:$0xff]  }
 0x674   : > { %v990_v45 = vpop.f32.mrf.mxu1  ;;  %2152 = vmatpush3.bf16.msra.mxu0 %v2259_v42  ;;  %2155 = vmatprep.mubr.msk.bf16.mxu0 %vm2296_vm0, %v2295_v1 }
 0x675   : > { %2153 = vmatprep.subr.bf16.mxu0 %v2295_v1 }
 0x676   : > { %v2138_v47 = vpop.f32.mrf.mxu1 }
 0x678   : > { %v2538_v48 = vpop.f32.mrf.mxu1  ;;  %2154 = vmatpush3.bf16.msra.mxu0 %v2260_v46 }
 0x679   : > { %2167 = vmatprep.subr.bf16.mxu0 %v2295_v1 }
 0x67a   : > { %v2149_v49 = vpop.f32.mrf.mxu1 }
 0x67b   : > { %2156 = vmatmul.mubr.msk.bf16.vlgmr.msra.gmra.mxu0 %vm408_vm1, %v2399_v6 }
 0x67c   : > { %v1085_v50 = vpop.f32.mrf.mxu1  ;;  %2171 = vmatprep.mubr.msk.bf16.mxu0 %vm2296_vm0, %v2295_v1  ;;  %2168 = vmatpush3.bf16.msra.mxu0 %v2261_v10 }
 0x67d   : > { %2169 = vmatprep.subr.bf16.mxu0 %v2295_v1 }
 0x67e   : > { %v2150_v51 = vpop.f32.mrf.mxu1 }
 0x680   : > { %v1212_v53 = vpop.f32.mrf.mxu1  ;;  %2170 = vmatpush3.bf16.msra.mxu0 %v2262_v11 }
 0x681   : > { %v1213_v54 = vadd.f32 %v1954_v52, %v1212_v53  ;;  %2181 = vmatprep.subr.bf16.mxu0 %v2295_v1 }
 0x682   : > { %v2165_v55 = vpop.f32.mrf.mxu1 }
 0x683   : > { %v1284_v56 = vpack.c.bf16 %v1213_v54, %v1213_v54  ;;  %2172 = vmatmul.mubr.msk.bf16.vlgmr.msra.gmra.mxu0 %vm408_vm1, %v2399_v6 }
 0x684   : > { %v1215_v57 = vpop.f32.mrf.mxu1  ;;  %2183 = vmatprep.mubr.msk.bf16.mxu0 %vm2296_vm0, %v2295_v1 }
 0x685   : > { %v1289_v58 = vsel %vm580_vm2, %v1284_v56, 0  ;;  %v1985_v57 = vld [vmem:[%s2678_s5 + $0x3] ss:$0 sm:$0xff] }
 0x686   : > { %v2166_v59 = vpop.f32.mrf.mxu1  ;;  %2176 = vmatpush3.bf16.xpose.msra.mxu1 %v1289_v58 }
 0x687   : > { %2187 = vmatprep.subr.bf16.mxu1 %v2295_v1 }
 0x733   : > { %v2550_v60 = vpop.f32.mrf.mxu0 }
 0x734   : > { %v1083_v51 = vadd.f32 %v2538_v48, %v2550_v60 }
 0x735   : > { %v2143_v61 = vpop.f32.mrf.mxu0 }
 0x737   : > { %v1039_v62 = vpop.f32.mrf.mxu0 }
 0x738   : > { %v1976_v62 = vld [vmem:[%s2677_s4 + $0x3] ss:$0 sm:$0xff] }
 0x739   : > { %v2144_v63 = vpop.f32.mrf.mxu0 }
 0x73b   : > { %v1147_v2 = vpop.f32.mrf.mxu0 }
 0x73c   : > { %v1148_v3 = vadd.f32 %v1945_v0, %v1147_v2 }
 0x73d   : > { %v2157_v4 = vpop.f32.mrf.mxu0 }
 0x73e   : > { %v1283_v7 = vpack.c.bf16 %v1148_v3, %v1148_v3  ;;  %v2267_v4 = vld [vmem:[%s2676_s3 + $0x38] sm:$0xff]  }
 0x73f   : > { %v1150_v8 = vpop.f32.mrf.mxu0 }
 0x740   : > { %2178 = vmatmul.mubr.msk.bf16.vlgmr.msra.gmra.mxu1 %vm580_vm2, %v1283_v7  ;;  %v2268_v7 = vld [vmem:[%s2676_s3 + $0x30] sm:$0xff]  }
 0x741   : > { %v2158_v9 = vpop.f32.mrf.mxu0  ;;  %2189 = vmatprep.mubr.msk.bf16.mxu1 %vm2296_vm0, %v2295_v1  ;;  %2188 = vmatpush3.bf16.msra.mxu1 %v1398_v32 }
 0x742   : > { %2201 = vmatprep.subr.bf16.mxu1 %v2295_v1 }
 0x743   : > { %v1277_v24 = vpop.f32.mrf.mxu0 }
 0x744   : > { %v1278_v25 = vadd.f32 %v1963_v23, %v1277_v24 }
 0x745   : > { %v2173_v26 = vpop.f32.mrf.mxu0 }
 0x746   : > { %v1344_v27 = vpack.c.bf16 %v1278_v25, %v1278_v25  ;;  %v2000_v25 = vld [vmem:[%s2680_s7 + $0xc] sm:$0xf] }
 0x747   : > { %v1280_v28 = vpop.f32.mrf.mxu0  ;;  %v1751_v26 = vsel %vm644_vm3, %v2000_v25, 0 }
 0x748   : > { %v1349_v29 = vsel %vm644_vm3, %v1344_v27, 0 }
 0x749   : > { %v2174_v30 = vpop.f32.mrf.mxu0  ;;  %2182 = vmatpush3.bf16.msra.mxu0 %v1349_v29 }
 0x74a   : > { %2193 = vmatprep.subr.bf16.mxu0 %v2295_v1 }
 0x800   : > { %v1325_v12 = vpop.f32.mrf.mxu1 }
 0x801   : > { %v1331_v13 = vmul.f32 0.35355338, %v1325_v12 }
 0x802   : > { %v2179_v14 = vpop.f32.mrf.mxu1 }
 0x803   : > { %v1332_v15 = vsel %vm580_vm2, %v1331_v13, -inf }
 0x804   : > { %1333 = vmax.xlane.f32.xlu0 %v1332_v15  ;;  %v1328_v16 = vpop.f32.mrf.mxu1 }
 0x806   : > { %v2180_v17 = vpop.f32.mrf.mxu1 }
 0x88d   : > { %v1334_v18 = vpop.xlane.xlu0 %1333 }
 0x88e   : > { %v1335_v19 = vsub.f32 %v1331_v13, %v1334_v18 }
 0x890   : > { %v1336_v20 = vmul.f32 1.442695, %v1335_v19 }
 0x892   : > { %2277 = vpow2.f32 %v1336_v20 }
 0x89f   : > { %v2278_v21 = vpop.eup %2277 }
 0x8a0   : > { %v1338_v22 = vsel %vm580_vm2, %v2278_v21, 0.0 }
 0x8a1   : > { %1339 = vadd.xlane.f32.xlu1 %v1338_v22 }
 0x92a   : > { %v1340_v33 = vpop.xlane.xlu1 %1339 }
 0x92b   : > { %2279 = vrcp.f32 %v1340_v33 }
 0x938   : > { %v2280_v34 = vpop.eup %2279 }
 0x939   : > { %v1342_v35 = vmul.f32 %v2280_v34, %v2278_v21 }
 0x93b   : > { %v1343_v36 = vpack.c.bf16 %v1342_v35, %v1342_v35 }
 0x93d   : > { %2184 = vmatmul.mubr.msk.bf16.vlgmr.msra.gmra.mxu0 %vm580_vm2, %v1343_v36 }
 0x93e   : > { %2197 = vmatprep.mubr.msk.bf16.mxu0 %vm2296_vm0, %v2295_v1  ;;  %2194 = vmatpush3.bf16.msra.mxu0 %v2264_v37 }
 0x93f   : > { %2195 = vmatprep.subr.bf16.mxu0 %v2295_v1 }
 0x942   : > { %2196 = vmatpush3.bf16.msra.mxu0 %v2266_v38 }
 0x943   : > { %2209 = vmatprep.subr.bf16.mxu0 %v2295_v1 }
 0x945   : > { %2198 = vmatmul.mubr.msk.bf16.vlgmr.msra.gmra.mxu0 %vm408_vm1, %v2399_v6 }
 0x946   : > { %2213 = vmatprep.mubr.msk.bf16.mxu0 %vm2296_vm0, %v2295_v1  ;;  %2210 = vmatpush3.bf16.msra.mxu0 %v2267_v4 }
 0x947   : > { %2211 = vmatprep.subr.bf16.mxu0 %v2295_v1 }
 0x94a   : > { %2212 = vmatpush3.bf16.msra.mxu0 %v2268_v7 }
 0x94b   : > { %2223 = vmatprep.subr.bf16.mxu0 %v2295_v1 }
 0x94d   : > { %2214 = vmatmul.mubr.msk.bf16.vlgmr.msra.gmra.mxu0 %vm408_vm1, %v2399_v6 }
 0x94e   : > { %2225 = vmatprep.mubr.msk.bf16.mxu0 %vm2296_vm0, %v2295_v1 }
 0x9fd   : > { %v1385_v39 = vpop.f32.mrf.mxu0 }
 0x9fe   : > { %v1391_v41 = vpack.c.bf16 %v1385_v39, %v1385_v39  ;;  %v2002_v39 = vld [vmem:[%s2681_s8] ss:$0 sm:$0xff] }
 0x9ff   : > { %v2185_v42 = vpop.f32.mrf.mxu0 }
 0xa00   : > { %2190 = vmatmul.mubr.msk.bf16.vlgmr.msra.gmra.mxu1 %vm580_vm2, %v1391_v41 }
 0xa01   : > { %v1388_v43 = vpop.f32.mrf.mxu0  ;;  %2202 = vmatpush3.bf16.msra.mxu1 %v2263_v40  ;;  %2205 = vmatprep.mubr.msk.bf16.mxu1 %vm2296_vm0, %v2295_v1 }
 0xa02   : > { %2203 = vmatprep.subr.bf16.mxu1 %v2295_v1 }
 0xa03   : > { %v2186_v45 = vpop.f32.mrf.mxu0 }
 0xa05   : > { %2204 = vmatpush3.bf16.msra.mxu1 %v2265_v44  ;;  %v1500_v46 = vpop.f32.mrf.mxu0 }
 0xa06   : > { %2217 = vmatprep.subr.bf16.mxu1 %v2295_v1  ;;  %v1501_v60 = vadd.f32 %v1976_v62, %v1500_v46 }
 0xa07   : > { %v2199_v47 = vpop.f32.mrf.mxu0 }
 0xa08   : > { %2206 = vmatmul.mubr.msk.bf16.vlgmr.msra.gmra.mxu1 %vm408_vm1, %v2399_v6  ;;  %v1636_v3 = vpack.c.bf16 %v1501_v60, %v1501_v60 }
 0xa09   : > { %2219 = vmatprep.mubr.msk.bf16.mxu1 %vm2296_vm0, %v2295_v1  ;;  %v1503_v49 = vpop.f32.mrf.mxu0 }
 0xa0b   : > { %v2200_v50 = vpop.f32.mrf.mxu0 }
 0xa0d   : > { %v1630_v6 = vpop.f32.mrf.mxu0 }
 0xa0f   : > { %v2215_v20 = vpop.f32.mrf.mxu0 }
 0xa11   : > { %v1633_v22 = vpop.f32.mrf.mxu0 }
 0xa13   : > { %v2216_v24 = vpop.f32.mrf.mxu0 }
 0xac0   : > { %v1434_v52 = vpop.f32.mrf.mxu1 }
 0xac1   : > { %v2614_v53 = vadd.f32 %v1434_v52, %v1083_v51 }
 0xac2   : > { %v2191_v54 = vpop.f32.mrf.mxu1 }
 0xac4   : > { %v1437_v55 = vpop.f32.mrf.mxu1 }
 0xac6   : > { %v2192_v56 = vpop.f32.mrf.mxu1 }
 0xac7   : > { %v2004_v56 = vld [vmem:[%s2683_s10] ss:$0 sm:$0xff] }
 0xac8   : > { %v1565_v58 = vpop.f32.mrf.mxu1 }
 0xac9   : > { %v1566_v59 = vadd.f32 %v1985_v57, %v1565_v58 }
 0xaca   : > { %v2207_v61 = vpop.f32.mrf.mxu1 }
 0xacb   : > { %v1637_v63 = vpack.c.bf16 %v1566_v59, %v1566_v59 }
 0xacc   : > { %v1568_v0 = vpop.f32.mrf.mxu1 }
 0xacd   : > { %v1642_v48 = vsel %vm580_vm2, %v1637_v63, 0 }
 0xace   : > { %v2208_v2 = vpop.f32.mrf.mxu1  ;;  %2218 = vmatpush3.bf16.xpose.msra.mxu1 %v1642_v48 }
 0xacf   : > { %2229 = vmatprep.subr.bf16.mxu1 %v2295_v1 }
 0xad5   : > { %2220 = vmatmul.mubr.msk.bf16.vlgmr.msra.gmra.mxu1 %vm580_vm2, %v1636_v3 }
 0xad6   : > { %2231 = vmatprep.mubr.msk.bf16.mxu1 %vm2296_vm0, %v2295_v1  ;;  %v1994_v1 = vld [vmem:[%s2679_s6 + $0x3] ss:$0 sm:$0xff]  ;;  %2230 = vmatpush3.bf16.msra.mxu1 %v1751_v26 }
 0xad7   : > { %v1631_v19 = vadd.f32 %v1994_v1, %v1630_v6 }
 0xad9   : > { %v1697_v21 = vpack.c.bf16 %v1631_v19, %v1631_v19 }
 0xadb   : > { %v1702_v23 = vsel %vm644_vm3, %v1697_v21, 0 }
 0xadc   : > { %2224 = vmatpush3.bf16.msra.mxu0 %v1702_v23 }
 0xb95   : > { %v1678_v8 = vpop.f32.mrf.mxu1 }
 0xb96   : > { %v1684_v9 = vmul.f32 0.35355338, %v1678_v8 }
 0xb97   : > { %v2221_v10 = vpop.f32.mrf.mxu1 }
 0xb98   : > { %v1685_v11 = vsel %vm580_vm2, %v1684_v9, -inf }
 0xb99   : > { %1686 = vmax.xlane.f32.xlu0 %v1685_v11  ;;  %v1681_v12 = vpop.f32.mrf.mxu1 }
 0xb9b   : > { %v2222_v13 = vpop.f32.mrf.mxu1 }
 0xc22   : > { %v1687_v14 = vpop.xlane.xlu0 %1686 }
 0xc23   : > { %v1688_v15 = vsub.f32 %v1684_v9, %v1687_v14 }
 0xc25   : > { %v1689_v16 = vmul.f32 1.442695, %v1688_v15 }
 0xc27   : > { %2281 = vpow2.f32 %v1689_v16 }
 0xc34   : > { %v2282_v17 = vpop.eup %2281 }
 0xc35   : > { %v1691_v18 = vsel %vm580_vm2, %v2282_v17, 0.0 }
 0xc36   : > { %1692 = vadd.xlane.f32.xlu1 %v1691_v18 }
 0xcbf   : > { %v1693_v27 = vpop.xlane.xlu1 %1692 }
 0xcc0   : > { %2283 = vrcp.f32 %v1693_v27 }
 0xccd   : > { %v2284_v28 = vpop.eup %2283 }
 0xcce   : > { %v1695_v29 = vmul.f32 %v2284_v28, %v2282_v17 }
 0xcd0   : > { %v1696_v30 = vpack.c.bf16 %v1695_v29, %v1695_v29 }
 0xcd2   : > { %2226 = vmatmul.mubr.msk.bf16.vlgmr.msra.gmra.mxu0 %vm580_vm2, %v1696_v30 }
 0xd92   : > { %v1738_v31 = vpop.f32.mrf.mxu0 }
 0xd93   : > { %v1744_v32 = vpack.c.bf16 %v1738_v31, %v1738_v31 }
 0xd94   : > { %v2227_v33 = vpop.f32.mrf.mxu0 }
 0xd95   : > { %2232 = vmatmul.mubr.msk.bf16.vlgmr.msra.gmra.mxu1 %vm580_vm2, %v1744_v32 }
 0xd96   : > { %v1741_v34 = vpop.f32.mrf.mxu0 }
 0xd98   : > { %v2228_v35 = vpop.f32.mrf.mxu0 }
 0xe55   : > { %v1787_v36 = vpop.f32.mrf.mxu1 }
 0xe56   : > { %v1793_v37 = vadd.f32 %v1787_v36, %v2614_v53 }
 0xe57   : > { %v2233_v38 = vpop.f32.mrf.mxu1 }
 0xe58   : > { %v1794_v40 = vadd.f32 %v1793_v37, %v2394_v5  ;;  %v2003_v5 = vld [vmem:[%s2682_s9] ss:$0 sm:$0xff] }
 0xe59   : > { %v1790_v41 = vpop.f32.mrf.mxu1 }
 0xe5a   : > { %v1802_v42 = vadd.f32 %v2002_v39, %v1794_v40 }
 0xe5b   : > { %v2234_v43 = vpop.f32.mrf.mxu1 }
 0xe5c   : > { %v1803_v44 = vsel %vm408_vm1, %v1802_v42, 0.0 }
 0xe5d   : > { %1804 = vadd.xlane.f32.xlu0 %v1803_v44 }
 0xee6   : > { %v1805_v45 = vpop.xlane.xlu0 %1804 }
 0xee7   : > { %v1807_v46 = vmul.f32 0.03125, %v1805_v45 }
 0xee9   : > { %v1808_v47 = vsub.f32 %v1802_v42, %v1807_v46 }
 0xeeb   : > { %v1809_v49 = vmul.f32 %v1808_v47, %v1808_v47 }
 0xeed   : > { %v1810_v50 = vsel %vm408_vm1, %v1809_v49, 0.0 }
 0xeee   : > { %1811 = vadd.xlane.f32.xlu1 %v1810_v50 }
 0xf77   : > { %v1812_v51 = vpop.xlane.xlu1 %1811 }
 0xf78   : > { %v1813_v52 = vmul.f32 0.03125, %v1812_v51 }
 0xf7a   : > { %v1814_v53 = vadd.f32 1e-05, %v1813_v52 }
 0xf7c   : > { %2285 = vrsqrt.f32 %v1814_v53 }
 0xf89   : > { %v2286_v54 = vpop.eup %2285 }
 0xf8a   : > { %v1816_v55 = vmul.f32 %v2286_v54, %v1808_v47 }
 0xf8c   : > { %v1824_v57 = vmul.f32 %v2003_v5, %v1816_v55 }
 0xf8e   : > { %v1832_v58 = vadd.f32 %v2004_v56, %v1824_v57 }
 0xf90   : > { %1833 = vst.msk [vmem:[%s381_s12] sm:$0xff] %vm408_vm1, %v1832_v58 }
 0xf91 PF: > { %s21_s17 = sadd.s32 1, %s2293_s17  }
 0xf92   : > { %p18_p4 = scmp.ge.s32.totalorder %s21_s17, 4  }
 0xf94   :  { %20 = sbr.rel (!%p18_p4) target bundleno = 1 (0x1), region = 115 }

</bundles_post_ra>
